<compile_context>
chip_gen: v6e
topology: v6e:2x2x1
jax: 0.10.0
libtpu: 0.0.40
codegen_flags: <defaults>
</compile_context>

<pallas_src>
import jax
import jax.numpy as jnp
from jax import lax
from jax.experimental import pallas as pl
from jax.experimental.pallas import tpu as pltpu


def _sigmoid_via_tanh(x):
    # sigmoid(x) == 0.5 * tanh(0.5 * x) + 0.5 : single EUP push per gate.
    return 0.5 * jnp.tanh(0.5 * x) + 0.5


def _round_up(x, m):
    return (x + m - 1) // m * m


def _make_lstm_kernel(seq_len, time_chunk, hidden, needs_mask, matmul_dtype):
    """LSTM recurrence kernel. One grid step == `time_chunk` timesteps.

    Refs:
      x_ref     : (TC, BB, E)  bf16  raw (time-major) embeddings for the chunk
      wih_ref   : (E, 4H)      bf16  input weight  (W_ih^T), resident
      whh_ref   : (H, 4H)      bf16  recurrent weight (W_hh^T), resident
      bias_ref  : (1, 4H)      f32   b_ih + b_hh
      hs_ref    : (BB, TC, H)  f32   batch-major hidden-state output block
      c_out_ref : (BB, H)      f32   final cell state (written on last chunk)
      xproj_sc  : (TC, BB, 4H) f32   per-chunk fused input projection
      h_sc,c_sc : (BB, H)      f32   state carried across time chunks
    """
    H = hidden

    def kernel(x_ref, wih_ref, whh_ref, bias_ref, hs_ref, c_out_ref,
               xproj_sc, h_sc, c_sc):
        tchunk = pl.program_id(1)

        @pl.when(tchunk == 0)
        def _():
            h_sc[...] = jnp.zeros_like(h_sc)
            c_sc[...] = jnp.zeros_like(c_sc)

        # ---- Prologue: fused (non-recurrent) input projection --------------
        # The MXU is nearly idle during the serial recurrence, so this chunk
        # of matmuls is effectively free and avoids the f32 xproj HBM
        # round-trip entirely.
        bias = bias_ref[...]                                   # (1, 4H) f32
        for t in range(time_chunk):                            # static unroll
            xproj_sc[t] = jnp.dot(
                x_ref[t], wih_ref[...],
                preferred_element_type=jnp.float32) + bias     # (BB, 4H) f32

        # ---- Serial recurrence ---------------------------------------------
        h_prev = h_sc[...]
        c_prev = c_sc[...]
        for t in range(time_chunk):                            # static unroll
            # Only the truly recurrent matmul lives on the serial chain.
            gates = xproj_sc[t] + jnp.dot(
                h_prev.astype(matmul_dtype), whh_ref[...],
                preferred_element_type=jnp.float32)            # (BB, 4H) f32
            # PyTorch LSTM gate order: i, f, g, o (lane-aligned when H%128==0).
            i_g = _sigmoid_via_tanh(gates[:, 0 * H:1 * H])
            f_g = _sigmoid_via_tanh(gates[:, 1 * H:2 * H])
            g_g = jnp.tanh(gates[:, 2 * H:3 * H])
            o_g = _sigmoid_via_tanh(gates[:, 3 * H:4 * H])
            c_new = f_g * c_prev + i_g * g_g
            h_new = o_g * jnp.tanh(c_new)
            if needs_mask:  # only when T was padded up to a chunk multiple
                valid = (tchunk * time_chunk + t) < seq_len
                h_new = jnp.where(valid, h_new, h_prev)
                c_new = jnp.where(valid, c_new, c_prev)
            # Batch-major, lane-dense (H=128) store; no output transpose pass.
            hs_ref[:, t, :] = h_new
            h_prev, c_prev = h_new, c_new

        h_sc[...] = h_prev
        c_sc[...] = c_prev

        @pl.when(tchunk == pl.num_programs(1) - 1)
        def _():
            c_out_ref[...] = c_prev

    return kernel


def encoder_forward(tokens, emb_table, w_ih, w_hh, b_ih, b_hh,
                    *, time_chunk=32, batch_block=128,
                    matmul_dtype=jnp.bfloat16):
    """tokens: (B, T) int32. Returns (hs (B,T,H), (h_T (B,H), c_T (B,H)))."""
    B, T = tokens.shape
    E = emb_table.shape[1]
    H = w_hh.shape[1]
    assert w_ih.shape == (4 * H, E) and w_hh.shape == (4 * H, H)

    # ---- Tile selection -----------------------------------------------------
    # Batch padded to full sublanes (multiple of 8); padded rows are discarded.
    B_pad = _round_up(B, 8)

    # Time chunk: multiple of 8 (sublane dim of the (BB, TC, H) output block)
    # unless it covers the whole (padded) sequence.
    TC = max(1, min(time_chunk, T))
    if TC < T:
        TC = min(_round_up(TC, 8), T)
    T_pad = _round_up(T, TC)
    n_tchunks = T_pad // TC
    needs_mask = (T_pad != T)

    # Batch block: multiple of 8, divides B_pad.
    BB = min(_round_up(max(1, batch_block), 8), B_pad)
    while B_pad % BB:
        BB -= 8
    # v7x: prefer >= 2 batch blocks so the "parallel" axis can use both
    # TensorCores (no effect on single-TC v5e/v6e; demo batch is too small).
    if B_pad // BB == 1 and B_pad >= 16 and (B_pad // 2) % 8 == 0:
        BB = B_pad // 2
    n_bblocks = B_pad // BB

    # ---- Host-side prep (cheap, int/bf16 only) ------------------------------
    tokens_p = tokens
    if B_pad != B:
        tokens_p = jnp.pad(tokens_p, ((0, B_pad - B), (0, 0)))
    if T_pad != T:  # pad the small int32 tokens, NOT a big projection tensor
        tokens_p = jnp.pad(tokens_p, ((0, 0), (0, T_pad - T)))

    # Time-major embedding gather (no wrapper transpose pass), bf16 for MXU.
    x_tm = emb_table[tokens_p.T].astype(matmul_dtype)          # (T_pad, B_pad, E)
    wih_t = w_ih.T.astype(matmul_dtype)                        # (E, 4H)
    whh_t = w_hh.T.astype(matmul_dtype)                        # (H, 4H)
    bias = (b_ih + b_hh).astype(jnp.float32).reshape(1, 4 * H)

    kernel = _make_lstm_kernel(T, TC, H, needs_mask, matmul_dtype)

    # ---- VMEM budget (double-buffered ins/outs + scratch) -------------------
    vmem_bytes = (
        2 * (TC * BB * E * 2)              # x chunk (bf16), double-buffered
        + 2 * (E * 4 * H * 2 + H * 4 * H * 2 + 4 * H * 4)   # weights + bias
        + 2 * (BB * TC * H * 4 + BB * H * 4)                 # outputs
        + TC * BB * 4 * H * 4 + 2 * BB * H * 4               # scratch
    )
    compiler_kwargs = dict(dimension_semantics=("parallel", "arbitrary"))
    if 2 * vmem_bytes > 16 * 2**20:
        # Raise the scoped VMEM limit only when the tiling actually needs it
        # (important on v7x: 64 MiB physical / 32 MiB default scoped).
        compiler_kwargs["vmem_limit_bytes"] = int(min(2 * vmem_bytes, 64 * 2**20))

    hs_p, c_last_p = pl.pallas_call(
        kernel,
        out_shape=(
            jax.ShapeDtypeStruct((B_pad, T_pad, H), jnp.float32),
            jax.ShapeDtypeStruct((B_pad, H), jnp.float32),
        ),
        grid_spec=pltpu.PrefetchScalarGridSpec(
            num_scalar_prefetch=0,
            grid=(n_bblocks, n_tchunks),      # (parallel batch, serial time)
            in_specs=[
                pl.BlockSpec((TC, BB, E), lambda b, t: (t, b, 0)),
                pl.BlockSpec((E, 4 * H), lambda b, t: (0, 0)),
                pl.BlockSpec((H, 4 * H), lambda b, t: (0, 0)),
                pl.BlockSpec((1, 4 * H), lambda b, t: (0, 0)),
            ],
            out_specs=[
                pl.BlockSpec((BB, TC, H), lambda b, t: (b, t, 0)),
                pl.BlockSpec((BB, H), lambda b, t: (b, 0)),
            ],
            scratch_shapes=[
                pltpu.VMEM((TC, BB, 4 * H), jnp.float32),   # fused xproj chunk
                pltpu.VMEM((BB, H), jnp.float32),           # h state
                pltpu.VMEM((BB, H), jnp.float32),           # c state
            ],
        ),
        compiler_params=pltpu.CompilerParams(**compiler_kwargs),
    )(x_tm, wih_t, whh_t, bias)

    hs = hs_p[:B, :T]                 # already batch-major: (B, T, H)
    h_last = hs_p[:B, T - 1]          # h_T == last valid row of hs
    c_last = c_last_p[:B]
    return hs, (h_last, c_last)


def encoder_reference(tokens, emb_table, w_ih, w_hh, b_ih, b_hh):
    """Pure-JAX f32 reference matching PyTorch nn.Embedding + nn.LSTM."""
    B, T = tokens.shape
    H = w_hh.shape[1]
    x = emb_table[tokens]                          # (B, T, E)
    bias = b_ih + b_hh

    def step(carry, x_t):
        h, c = carry
        gates = x_t @ w_ih.T + h @ w_hh.T + bias
        i_g = jax.nn.sigmoid(gates[:, 0 * H:1 * H])
        f_g = jax.nn.sigmoid(gates[:, 1 * H:2 * H])
        g_g = jnp.tanh(gates[:, 2 * H:3 * H])
        o_g = jax.nn.sigmoid(gates[:, 3 * H:4 * H])
        c = f_g * c + i_g * g_g
        h = o_g * jnp.tanh(c)
        return (h, c), h

    h0 = jnp.zeros((B, H), jnp.float32)
    (h_T, c_T), hs = lax.scan(step, (h0, h0), jnp.transpose(x, (1, 0, 2)))
    return jnp.transpose(hs, (1, 0, 2)), (h_T, c_T)


def init_params(key, vocab_size, embed_size, hidden_size):
    """Deterministic param init mimicking PyTorch's nn.Embedding / nn.LSTM."""
    k_emb, k_wih, k_whh, k_bih, k_bhh = jax.random.split(key, 5)
    emb_table = jax.random.normal(k_emb, (vocab_size, embed_size), jnp.float32)
    bound = 1.0 / jnp.sqrt(hidden_size)
    w_ih = jax.random.uniform(k_wih, (4 * hidden_size, embed_size),
                              jnp.float32, -bound, bound)
    w_hh = jax.random.uniform(k_whh, (4 * hidden_size, hidden_size),
                              jnp.float32, -bound, bound)
    b_ih = jax.random.uniform(k_bih, (4 * hidden_size,),
                              jnp.float32, -bound, bound)
    b_hh = jax.random.uniform(k_bhh, (4 * hidden_size,),
                              jnp.float32, -bound, bound)
    return emb_table, w_ih, w_hh, b_ih, b_hh


if __name__ == "__main__":
    VOCAB, EMBED, HIDDEN = 16, 64, 128    # H multiple of 128 -> lane-aligned gates
    B, T = 2, 8

    key = jax.random.PRNGKey(0)
    k_params, k_tokens = jax.random.split(key)
    emb_table, w_ih, w_hh, b_ih, b_hh = init_params(k_params, VOCAB, EMBED, HIDDEN)
    tokens = jax.random.randint(k_tokens, (B, T), 0, VOCAB, dtype=jnp.int32)

    hs, (h_last, c_last) = jax.jit(encoder_forward)(
        tokens, emb_table, w_ih, w_hh, b_ih, b_hh)
    jax.block_until_ready((hs, h_last, c_last))

    assert hs.shape == (B, T, HIDDEN)
    assert h_last.shape == (B, HIDDEN)
    assert c_last.shape == (B, HIDDEN)

    # Numerical sanity check vs pure-JAX f32 reference (kernel uses bf16 MXU
    # operands with f32 accumulation, so allow a loose tolerance).
    hs_r, (h_r, c_r) = encoder_reference(tokens, emb_table, w_ih, w_hh, b_ih, b_hh)
    assert float(jnp.max(jnp.abs(hs - hs_r))) < 5e-2
    assert float(jnp.max(jnp.abs(h_last - h_r))) < 5e-2
    assert float(jnp.max(jnp.abs(c_last - c_r))) < 5e-2

    print("KERNEL_OK")
</pallas_src>

<mosaic_0001>
module attributes {stable_mosaic.version = 11 : i64} {
  func.func @kernel(%arg0: i32, %arg1: i32, %arg2: memref<8x8x64xbf16, #tpu.memory_space<vmem>>, %arg3: memref<64x512xbf16, #tpu.memory_space<vmem>>, %arg4: memref<128x512xbf16, #tpu.memory_space<vmem>>, %arg5: memref<1x512xf32, #tpu.memory_space<vmem>>, %arg6: memref<8x8x128xf32, #tpu.memory_space<vmem>>, %arg7: memref<8x128xf32, #tpu.memory_space<vmem>>, %arg8: memref<8x8x512xf32, #tpu.memory_space<vmem>>, %arg9: memref<8x128xf32, #tpu.memory_space<vmem>>, %arg10: memref<8x128xf32, #tpu.memory_space<vmem>>) attributes {dimension_semantics = [#tpu.dimension_semantics<parallel>, #tpu.dimension_semantics<arbitrary>], iteration_bounds = array<i64: 1, 1>, scalar_prefetch = 0 : i64, scratch_operands = 3 : i64, tpu.core_type = #tpu.core_type<tc>, window_params = [{transform_indices = @transform_0, window_bounds = array<i64: 8, 8, 64>}, {pipeline_mode = #tpu.pipeline_mode<synchronous>, transform_indices = @transform_1, window_bounds = array<i64: 64, 512>}, {pipeline_mode = #tpu.pipeline_mode<synchronous>, transform_indices = @transform_2, window_bounds = array<i64: 128, 512>}, {pipeline_mode = #tpu.pipeline_mode<synchronous>, transform_indices = @transform_3, window_bounds = array<i64: 1, 512>}, {transform_indices = @transform_4, window_bounds = array<i64: 8, 8, 128>}, {transform_indices = @transform_5, window_bounds = array<i64: 8, 128>}]} {
    %c0_i32 = arith.constant 0 : i32
    %0 = arith.cmpi eq, %arg1, %c0_i32 : i32
    %1 = arith.extui %0 : i1 to i32
    %c0_i32_0 = arith.constant 0 : i32
    %2 = arith.cmpi ne, %1, %c0_i32_0 : i32
    scf.if %2 {
      %cst_220 = arith.constant 0.000000e+00 : f32
      %403 = vector.broadcast %cst_220 : f32 to vector<8x128xf32>
      %c0_221 = arith.constant 0 : index
      %c0_222 = arith.constant 0 : index
      %404 = vector.load %arg9[%c0_221, %c0_222] : memref<8x128xf32, #tpu.memory_space<vmem>>, vector<8x128xf32>
      tpu.vector_store %arg9[%c0_221, %c0_222], %403 {strides = array<i32>} : memref<8x128xf32, #tpu.memory_space<vmem>>, vector<8x128xf32>,
      %cst_223 = arith.constant 0.000000e+00 : f32
      %405 = vector.broadcast %cst_223 : f32 to vector<8x128xf32>
      %c0_224 = arith.constant 0 : index
      %c0_225 = arith.constant 0 : index
      %406 = vector.load %arg10[%c0_224, %c0_225] : memref<8x128xf32, #tpu.memory_space<vmem>>, vector<8x128xf32>
      tpu.vector_store %arg10[%c0_224, %c0_225], %405 {strides = array<i32>} : memref<8x128xf32, #tpu.memory_space<vmem>>, vector<8x128xf32>,
    } else {
    }
    %c0 = arith.constant 0 : index
    %c0_1 = arith.constant 0 : index
    %3 = vector.load %arg5[%c0, %c0_1] : memref<1x512xf32, #tpu.memory_space<vmem>>, vector<1x512xf32>
    %c0_2 = arith.constant 0 : index
    %c0_3 = arith.constant 0 : index
    %c0_4 = arith.constant 0 : index
    %4 = vector.load %arg2[%c0_2, %c0_3, %c0_4] : memref<8x8x64xbf16, #tpu.memory_space<vmem>>, vector<1x8x64xbf16>
    %5 = vector.shape_cast %4 : vector<1x8x64xbf16> to vector<8x64xbf16>
    %c0_5 = arith.constant 0 : index
    %c0_6 = arith.constant 0 : index
    %6 = vector.load %arg3[%c0_5, %c0_6] : memref<64x512xbf16, #tpu.memory_space<vmem>>, vector<64x512xbf16>
    %cst = arith.constant dense<0.000000e+00> : vector<8x512xf32>
    %7 = tpu.matmul %5, %6, %cst {dimension_numbers = #tpu.dot_dimension_numbers<[1], [0], [0], [1], [0, 0, 1, 1], [], []>} : vector<8x64xbf16>, vector<64x512xbf16>, vector<8x512xf32> -> vector<8x512xf32>
    %8 = vector.broadcast %3 : vector<1x512xf32> to vector<8x512xf32>
    %9 = arith.addf %7, %8 : vector<8x512xf32>
    %c0_7 = arith.constant 0 : index
    %c0_8 = arith.constant 0 : index
    %c0_9 = arith.constant 0 : index
    %10 = vector.load %arg8[%c0_7, %c0_8, %c0_9] : memref<8x8x512xf32, #tpu.memory_space<vmem>>, vector<1x8x512xf32>
    %11 = vector.shape_cast %10 : vector<1x8x512xf32> to vector<8x512xf32>
    %12 = vector.shape_cast %9 : vector<8x512xf32> to vector<1x8x512xf32>
    tpu.vector_store %arg8[%c0_7, %c0_8, %c0_9], %12 {strides = array<i32>} : memref<8x8x512xf32, #tpu.memory_space<vmem>>, vector<1x8x512xf32>,
    %c1 = arith.constant 1 : index
    %c0_10 = arith.constant 0 : index
    %c0_11 = arith.constant 0 : index
    %13 = vector.load %arg2[%c1, %c0_10, %c0_11] : memref<8x8x64xbf16, #tpu.memory_space<vmem>>, vector<1x8x64xbf16>
    %14 = vector.shape_cast %13 : vector<1x8x64xbf16> to vector<8x64xbf16>
    %c0_12 = arith.constant 0 : index
    %c0_13 = arith.constant 0 : index
    %15 = vector.load %arg3[%c0_12, %c0_13] : memref<64x512xbf16, #tpu.memory_space<vmem>>, vector<64x512xbf16>
    %cst_14 = arith.constant dense<0.000000e+00> : vector<8x512xf32>
    %16 = tpu.matmul %14, %15, %cst_14 {dimension_numbers = #tpu.dot_dimension_numbers<[1], [0], [0], [1], [0, 0, 1, 1], [], []>} : vector<8x64xbf16>, vector<64x512xbf16>, vector<8x512xf32> -> vector<8x512xf32>
    %17 = vector.broadcast %3 : vector<1x512xf32> to vector<8x512xf32>
    %18 = arith.addf %16, %17 : vector<8x512xf32>
    %c1_15 = arith.constant 1 : index
    %c0_16 = arith.constant 0 : index
    %c0_17 = arith.constant 0 : index
    %19 = vector.load %arg8[%c1_15, %c0_16, %c0_17] : memref<8x8x512xf32, #tpu.memory_space<vmem>>, vector<1x8x512xf32>
    %20 = vector.shape_cast %19 : vector<1x8x512xf32> to vector<8x512xf32>
    %21 = vector.shape_cast %18 : vector<8x512xf32> to vector<1x8x512xf32>
    tpu.vector_store %arg8[%c1_15, %c0_16, %c0_17], %21 {strides = array<i32>} : memref<8x8x512xf32, #tpu.memory_space<vmem>>, vector<1x8x512xf32>,
    %c2 = arith.constant 2 : index
    %c0_18 = arith.constant 0 : index
    %c0_19 = arith.constant 0 : index
    %22 = vector.load %arg2[%c2, %c0_18, %c0_19] : memref<8x8x64xbf16, #tpu.memory_space<vmem>>, vector<1x8x64xbf16>
    %23 = vector.shape_cast %22 : vector<1x8x64xbf16> to vector<8x64xbf16>
    %c0_20 = arith.constant 0 : index
    %c0_21 = arith.constant 0 : index
    %24 = vector.load %arg3[%c0_20, %c0_21] : memref<64x512xbf16, #tpu.memory_space<vmem>>, vector<64x512xbf16>
    %cst_22 = arith.constant dense<0.000000e+00> : vector<8x512xf32>
    %25 = tpu.matmul %23, %24, %cst_22 {dimension_numbers = #tpu.dot_dimension_numbers<[1], [0], [0], [1], [0, 0, 1, 1], [], []>} : vector<8x64xbf16>, vector<64x512xbf16>, vector<8x512xf32> -> vector<8x512xf32>
    %26 = vector.broadcast %3 : vector<1x512xf32> to vector<8x512xf32>
    %27 = arith.addf %25, %26 : vector<8x512xf32>
    %c2_23 = arith.constant 2 : index
    %c0_24 = arith.constant 0 : index
    %c0_25 = arith.constant 0 : index
    %28 = vector.load %arg8[%c2_23, %c0_24, %c0_25] : memref<8x8x512xf32, #tpu.memory_space<vmem>>, vector<1x8x512xf32>
    %29 = vector.shape_cast %28 : vector<1x8x512xf32> to vector<8x512xf32>
    %30 = vector.shape_cast %27 : vector<8x512xf32> to vector<1x8x512xf32>
    tpu.vector_store %arg8[%c2_23, %c0_24, %c0_25], %30 {strides = array<i32>} : memref<8x8x512xf32, #tpu.memory_space<vmem>>, vector<1x8x512xf32>,
    %c3 = arith.constant 3 : index
    %c0_26 = arith.constant 0 : index
    %c0_27 = arith.constant 0 : index
    %31 = vector.load %arg2[%c3, %c0_26, %c0_27] : memref<8x8x64xbf16, #tpu.memory_space<vmem>>, vector<1x8x64xbf16>
    %32 = vector.shape_cast %31 : vector<1x8x64xbf16> to vector<8x64xbf16>
    %c0_28 = arith.constant 0 : index
    %c0_29 = arith.constant 0 : index
    %33 = vector.load %arg3[%c0_28, %c0_29] : memref<64x512xbf16, #tpu.memory_space<vmem>>, vector<64x512xbf16>
    %cst_30 = arith.constant dense<0.000000e+00> : vector<8x512xf32>
    %34 = tpu.matmul %32, %33, %cst_30 {dimension_numbers = #tpu.dot_dimension_numbers<[1], [0], [0], [1], [0, 0, 1, 1], [], []>} : vector<8x64xbf16>, vector<64x512xbf16>, vector<8x512xf32> -> vector<8x512xf32>
    %35 = vector.broadcast %3 : vector<1x512xf32> to vector<8x512xf32>
    %36 = arith.addf %34, %35 : vector<8x512xf32>
    %c3_31 = arith.constant 3 : index
    %c0_32 = arith.constant 0 : index
    %c0_33 = arith.constant 0 : index
    %37 = vector.load %arg8[%c3_31, %c0_32, %c0_33] : memref<8x8x512xf32, #tpu.memory_space<vmem>>, vector<1x8x512xf32>
    %38 = vector.shape_cast %37 : vector<1x8x512xf32> to vector<8x512xf32>
    %39 = vector.shape_cast %36 : vector<8x512xf32> to vector<1x8x512xf32>
    tpu.vector_store %arg8[%c3_31, %c0_32, %c0_33], %39 {strides = array<i32>} : memref<8x8x512xf32, #tpu.memory_space<vmem>>, vector<1x8x512xf32>,
    %c4 = arith.constant 4 : index
    %c0_34 = arith.constant 0 : index
    %c0_35 = arith.constant 0 : index
    %40 = vector.load %arg2[%c4, %c0_34, %c0_35] : memref<8x8x64xbf16, #tpu.memory_space<vmem>>, vector<1x8x64xbf16>
    %41 = vector.shape_cast %40 : vector<1x8x64xbf16> to vector<8x64xbf16>
    %c0_36 = arith.constant 0 : index
    %c0_37 = arith.constant 0 : index
    %42 = vector.load %arg3[%c0_36, %c0_37] : memref<64x512xbf16, #tpu.memory_space<vmem>>, vector<64x512xbf16>
    %cst_38 = arith.constant dense<0.000000e+00> : vector<8x512xf32>
    %43 = tpu.matmul %41, %42, %cst_38 {dimension_numbers = #tpu.dot_dimension_numbers<[1], [0], [0], [1], [0, 0, 1, 1], [], []>} : vector<8x64xbf16>, vector<64x512xbf16>, vector<8x512xf32> -> vector<8x512xf32>
    %44 = vector.broadcast %3 : vector<1x512xf32> to vector<8x512xf32>
    %45 = arith.addf %43, %44 : vector<8x512xf32>
    %c4_39 = arith.constant 4 : index
    %c0_40 = arith.constant 0 : index
    %c0_41 = arith.constant 0 : index
    %46 = vector.load %arg8[%c4_39, %c0_40, %c0_41] : memref<8x8x512xf32, #tpu.memory_space<vmem>>, vector<1x8x512xf32>
    %47 = vector.shape_cast %46 : vector<1x8x512xf32> to vector<8x512xf32>
    %48 = vector.shape_cast %45 : vector<8x512xf32> to vector<1x8x512xf32>
    tpu.vector_store %arg8[%c4_39, %c0_40, %c0_41], %48 {strides = array<i32>} : memref<8x8x512xf32, #tpu.memory_space<vmem>>, vector<1x8x512xf32>,
    %c5 = arith.constant 5 : index
    %c0_42 = arith.constant 0 : index
    %c0_43 = arith.constant 0 : index
    %49 = vector.load %arg2[%c5, %c0_42, %c0_43] : memref<8x8x64xbf16, #tpu.memory_space<vmem>>, vector<1x8x64xbf16>
    %50 = vector.shape_cast %49 : vector<1x8x64xbf16> to vector<8x64xbf16>
    %c0_44 = arith.constant 0 : index
    %c0_45 = arith.constant 0 : index
    %51 = vector.load %arg3[%c0_44, %c0_45] : memref<64x512xbf16, #tpu.memory_space<vmem>>, vector<64x512xbf16>
    %cst_46 = arith.constant dense<0.000000e+00> : vector<8x512xf32>
    %52 = tpu.matmul %50, %51, %cst_46 {dimension_numbers = #tpu.dot_dimension_numbers<[1], [0], [0], [1], [0, 0, 1, 1], [], []>} : vector<8x64xbf16>, vector<64x512xbf16>, vector<8x512xf32> -> vector<8x512xf32>
    %53 = vector.broadcast %3 : vector<1x512xf32> to vector<8x512xf32>
    %54 = arith.addf %52, %53 : vector<8x512xf32>
    %c5_47 = arith.constant 5 : index
    %c0_48 = arith.constant 0 : index
    %c0_49 = arith.constant 0 : index
    %55 = vector.load %arg8[%c5_47, %c0_48, %c0_49] : memref<8x8x512xf32, #tpu.memory_space<vmem>>, vector<1x8x512xf32>
    %56 = vector.shape_cast %55 : vector<1x8x512xf32> to vector<8x512xf32>
    %57 = vector.shape_cast %54 : vector<8x512xf32> to vector<1x8x512xf32>
    tpu.vector_store %arg8[%c5_47, %c0_48, %c0_49], %57 {strides = array<i32>} : memref<8x8x512xf32, #tpu.memory_space<vmem>>, vector<1x8x512xf32>,
    %c6 = arith.constant 6 : index
    %c0_50 = arith.constant 0 : index
    %c0_51 = arith.constant 0 : index
    %58 = vector.load %arg2[%c6, %c0_50, %c0_51] : memref<8x8x64xbf16, #tpu.memory_space<vmem>>, vector<1x8x64xbf16>
    %59 = vector.shape_cast %58 : vector<1x8x64xbf16> to vector<8x64xbf16>
    %c0_52 = arith.constant 0 : index
    %c0_53 = arith.constant 0 : index
    %60 = vector.load %arg3[%c0_52, %c0_53] : memref<64x512xbf16, #tpu.memory_space<vmem>>, vector<64x512xbf16>
    %cst_54 = arith.constant dense<0.000000e+00> : vector<8x512xf32>
    %61 = tpu.matmul %59, %60, %cst_54 {dimension_numbers = #tpu.dot_dimension_numbers<[1], [0], [0], [1], [0, 0, 1, 1], [], []>} : vector<8x64xbf16>, vector<64x512xbf16>, vector<8x512xf32> -> vector<8x512xf32>
    %62 = vector.broadcast %3 : vector<1x512xf32> to vector<8x512xf32>
    %63 = arith.addf %61, %62 : vector<8x512xf32>
    %c6_55 = arith.constant 6 : index
    %c0_56 = arith.constant 0 : index
    %c0_57 = arith.constant 0 : index
    %64 = vector.load %arg8[%c6_55, %c0_56, %c0_57] : memref<8x8x512xf32, #tpu.memory_space<vmem>>, vector<1x8x512xf32>
    %65 = vector.shape_cast %64 : vector<1x8x512xf32> to vector<8x512xf32>
    %66 = vector.shape_cast %63 : vector<8x512xf32> to vector<1x8x512xf32>
    tpu.vector_store %arg8[%c6_55, %c0_56, %c0_57], %66 {strides = array<i32>} : memref<8x8x512xf32, #tpu.memory_space<vmem>>, vector<1x8x512xf32>,
    %c7 = arith.constant 7 : index
    %c0_58 = arith.constant 0 : index
    %c0_59 = arith.constant 0 : index
    %67 = vector.load %arg2[%c7, %c0_58, %c0_59] : memref<8x8x64xbf16, #tpu.memory_space<vmem>>, vector<1x8x64xbf16>
    %68 = vector.shape_cast %67 : vector<1x8x64xbf16> to vector<8x64xbf16>
    %c0_60 = arith.constant 0 : index
    %c0_61 = arith.constant 0 : index
    %69 = vector.load %arg3[%c0_60, %c0_61] : memref<64x512xbf16, #tpu.memory_space<vmem>>, vector<64x512xbf16>
    %cst_62 = arith.constant dense<0.000000e+00> : vector<8x512xf32>
    %70 = tpu.matmul %68, %69, %cst_62 {dimension_numbers = #tpu.dot_dimension_numbers<[1], [0], [0], [1], [0, 0, 1, 1], [], []>} : vector<8x64xbf16>, vector<64x512xbf16>, vector<8x512xf32> -> vector<8x512xf32>
    %71 = vector.broadcast %3 : vector<1x512xf32> to vector<8x512xf32>
    %72 = arith.addf %70, %71 : vector<8x512xf32>
    %c7_63 = arith.constant 7 : index
    %c0_64 = arith.constant 0 : index
    %c0_65 = arith.constant 0 : index
    %73 = vector.load %arg8[%c7_63, %c0_64, %c0_65] : memref<8x8x512xf32, #tpu.memory_space<vmem>>, vector<1x8x512xf32>
    %74 = vector.shape_cast %73 : vector<1x8x512xf32> to vector<8x512xf32>
    %75 = vector.shape_cast %72 : vector<8x512xf32> to vector<1x8x512xf32>
    tpu.vector_store %arg8[%c7_63, %c0_64, %c0_65], %75 {strides = array<i32>} : memref<8x8x512xf32, #tpu.memory_space<vmem>>, vector<1x8x512xf32>,
    %c0_66 = arith.constant 0 : index
    %c0_67 = arith.constant 0 : index
    %76 = vector.load %arg9[%c0_66, %c0_67] : memref<8x128xf32, #tpu.memory_space<vmem>>, vector<8x128xf32>
    %c0_68 = arith.constant 0 : index
    %c0_69 = arith.constant 0 : index
    %77 = vector.load %arg10[%c0_68, %c0_69] : memref<8x128xf32, #tpu.memory_space<vmem>>, vector<8x128xf32>
    %c0_70 = arith.constant 0 : index
    %c0_71 = arith.constant 0 : index
    %c0_72 = arith.constant 0 : index
    %78 = vector.load %arg8[%c0_70, %c0_71, %c0_72] : memref<8x8x512xf32, #tpu.memory_space<vmem>>, vector<1x8x512xf32>
    %79 = vector.shape_cast %78 : vector<1x8x512xf32> to vector<8x512xf32>
    %80 = arith.truncf %76 : vector<8x128xf32> to vector<8x128xbf16>
    %c0_73 = arith.constant 0 : index
    %c0_74 = arith.constant 0 : index
    %81 = vector.load %arg4[%c0_73, %c0_74] : memref<128x512xbf16, #tpu.memory_space<vmem>>, vector<128x512xbf16>
    %cst_75 = arith.constant dense<0.000000e+00> : vector<8x512xf32>
    %82 = tpu.matmul %80, %81, %cst_75 {dimension_numbers = #tpu.dot_dimension_numbers<[1], [0], [0], [1], [0, 0, 1, 1], [], []>} : vector<8x128xbf16>, vector<128x512xbf16>, vector<8x512xf32> -> vector<8x512xf32>
    %83 = arith.addf %79, %82 : vector<8x512xf32>
    %84 = vector.extract_strided_slice %83 {offsets = [0, 0], sizes = [8, 128], strides = [1, 1]} : vector<8x512xf32> to vector<8x128xf32>
    %cst_76 = arith.constant 5.000000e-01 : f32
    %85 = vector.broadcast %cst_76 : f32 to vector<8x128xf32>
    %86 = arith.mulf %85, %84 : vector<8x128xf32>
    %87 = math.tanh %86 : vector<8x128xf32>
    %cst_77 = arith.constant 5.000000e-01 : f32
    %88 = vector.broadcast %cst_77 : f32 to vector<8x128xf32>
    %89 = arith.mulf %88, %87 : vector<8x128xf32>
    %cst_78 = arith.constant 5.000000e-01 : f32
    %90 = vector.broadcast %cst_78 : f32 to vector<8x128xf32>
    %91 = arith.addf %89, %90 : vector<8x128xf32>
    %92 = vector.extract_strided_slice %83 {offsets = [0, 128], sizes = [8, 128], strides = [1, 1]} : vector<8x512xf32> to vector<8x128xf32>
    %cst_79 = arith.constant 5.000000e-01 : f32
    %93 = vector.broadcast %cst_79 : f32 to vector<8x128xf32>
    %94 = arith.mulf %93, %92 : vector<8x128xf32>
    %95 = math.tanh %94 : vector<8x128xf32>
    %cst_80 = arith.constant 5.000000e-01 : f32
    %96 = vector.broadcast %cst_80 : f32 to vector<8x128xf32>
    %97 = arith.mulf %96, %95 : vector<8x128xf32>
    %cst_81 = arith.constant 5.000000e-01 : f32
    %98 = vector.broadcast %cst_81 : f32 to vector<8x128xf32>
    %99 = arith.addf %97, %98 : vector<8x128xf32>
    %100 = vector.extract_strided_slice %83 {offsets = [0, 256], sizes = [8, 128], strides = [1, 1]} : vector<8x512xf32> to vector<8x128xf32>
    %101 = math.tanh %100 : vector<8x128xf32>
    %102 = vector.extract_strided_slice %83 {offsets = [0, 384], sizes = [8, 128], strides = [1, 1]} : vector<8x512xf32> to vector<8x128xf32>
    %cst_82 = arith.constant 5.000000e-01 : f32
    %103 = vector.broadcast %cst_82 : f32 to vector<8x128xf32>
    %104 = arith.mulf %103, %102 : vector<8x128xf32>
    %105 = math.tanh %104 : vector<8x128xf32>
    %cst_83 = arith.constant 5.000000e-01 : f32
    %106 = vector.broadcast %cst_83 : f32 to vector<8x128xf32>
    %107 = arith.mulf %106, %105 : vector<8x128xf32>
    %cst_84 = arith.constant 5.000000e-01 : f32
    %108 = vector.broadcast %cst_84 : f32 to vector<8x128xf32>
    %109 = arith.addf %107, %108 : vector<8x128xf32>
    %110 = arith.mulf %99, %77 : vector<8x128xf32>
    %111 = arith.mulf %91, %101 : vector<8x128xf32>
    %112 = arith.addf %110, %111 : vector<8x128xf32>
    %113 = math.tanh %112 : vector<8x128xf32>
    %114 = arith.mulf %109, %113 : vector<8x128xf32>
    %c0_85 = arith.constant 0 : index
    %c0_86 = arith.constant 0 : index
    %c0_87 = arith.constant 0 : index
    %115 = vector.load %arg6[%c0_85, %c0_86, %c0_87] : memref<8x8x128xf32, #tpu.memory_space<vmem>>, vector<8x1x128xf32>
    %116 = vector.shape_cast %115 : vector<8x1x128xf32> to vector<8x128xf32>
    %117 = vector.shape_cast %114 : vector<8x128xf32> to vector<8x1x128xf32>
    tpu.vector_store %arg6[%c0_85, %c0_86, %c0_87], %117 {strides = array<i32>} : memref<8x8x128xf32, #tpu.memory_space<vmem>>, vector<8x1x128xf32>,
    %c1_88 = arith.constant 1 : index
    %c0_89 = arith.constant 0 : index
    %c0_90 = arith.constant 0 : index
    %118 = vector.load %arg8[%c1_88, %c0_89, %c0_90] : memref<8x8x512xf32, #tpu.memory_space<vmem>>, vector<1x8x512xf32>
    %119 = vector.shape_cast %118 : vector<1x8x512xf32> to vector<8x512xf32>
    %120 = arith.truncf %114 : vector<8x128xf32> to vector<8x128xbf16>
    %c0_91 = arith.constant 0 : index
    %c0_92 = arith.constant 0 : index
    %121 = vector.load %arg4[%c0_91, %c0_92] : memref<128x512xbf16, #tpu.memory_space<vmem>>, vector<128x512xbf16>
    %cst_93 = arith.constant dense<0.000000e+00> : vector<8x512xf32>
    %122 = tpu.matmul %120, %121, %cst_93 {dimension_numbers = #tpu.dot_dimension_numbers<[1], [0], [0], [1], [0, 0, 1, 1], [], []>} : vector<8x128xbf16>, vector<128x512xbf16>, vector<8x512xf32> -> vector<8x512xf32>
    %123 = arith.addf %119, %122 : vector<8x512xf32>
    %124 = vector.extract_strided_slice %123 {offsets = [0, 0], sizes = [8, 128], strides = [1, 1]} : vector<8x512xf32> to vector<8x128xf32>
    %cst_94 = arith.constant 5.000000e-01 : f32
    %125 = vector.broadcast %cst_94 : f32 to vector<8x128xf32>
    %126 = arith.mulf %125, %124 : vector<8x128xf32>
    %127 = math.tanh %126 : vector<8x128xf32>
    %cst_95 = arith.constant 5.000000e-01 : f32
    %128 = vector.broadcast %cst_95 : f32 to vector<8x128xf32>
    %129 = arith.mulf %128, %127 : vector<8x128xf32>
    %cst_96 = arith.constant 5.000000e-01 : f32
    %130 = vector.broadcast %cst_96 : f32 to vector<8x128xf32>
    %131 = arith.addf %129, %130 : vector<8x128xf32>
    %132 = vector.extract_strided_slice %123 {offsets = [0, 128], sizes = [8, 128], strides = [1, 1]} : vector<8x512xf32> to vector<8x128xf32>
    %cst_97 = arith.constant 5.000000e-01 : f32
    %133 = vector.broadcast %cst_97 : f32 to vector<8x128xf32>
    %134 = arith.mulf %133, %132 : vector<8x128xf32>
    %135 = math.tanh %134 : vector<8x128xf32>
    %cst_98 = arith.constant 5.000000e-01 : f32
    %136 = vector.broadcast %cst_98 : f32 to vector<8x128xf32>
    %137 = arith.mulf %136, %135 : vector<8x128xf32>
    %cst_99 = arith.constant 5.000000e-01 : f32
    %138 = vector.broadcast %cst_99 : f32 to vector<8x128xf32>
    %139 = arith.addf %137, %138 : vector<8x128xf32>
    %140 = vector.extract_strided_slice %123 {offsets = [0, 256], sizes = [8, 128], strides = [1, 1]} : vector<8x512xf32> to vector<8x128xf32>
    %141 = math.tanh %140 : vector<8x128xf32>
    %142 = vector.extract_strided_slice %123 {offsets = [0, 384], sizes = [8, 128], strides = [1, 1]} : vector<8x512xf32> to vector<8x128xf32>
    %cst_100 = arith.constant 5.000000e-01 : f32
    %143 = vector.broadcast %cst_100 : f32 to vector<8x128xf32>
    %144 = arith.mulf %143, %142 : vector<8x128xf32>
    %145 = math.tanh %144 : vector<8x128xf32>
    %cst_101 = arith.constant 5.000000e-01 : f32
    %146 = vector.broadcast %cst_101 : f32 to vector<8x128xf32>
    %147 = arith.mulf %146, %145 : vector<8x128xf32>
    %cst_102 = arith.constant 5.000000e-01 : f32
    %148 = vector.broadcast %cst_102 : f32 to vector<8x128xf32>
    %149 = arith.addf %147, %148 : vector<8x128xf32>
    %150 = arith.mulf %139, %112 : vector<8x128xf32>
    %151 = arith.mulf %131, %141 : vector<8x128xf32>
    %152 = arith.addf %150, %151 : vector<8x128xf32>
    %153 = math.tanh %152 : vector<8x128xf32>
    %154 = arith.mulf %149, %153 : vector<8x128xf32>
    %c0_103 = arith.constant 0 : index
    %c1_104 = arith.constant 1 : index
    %c0_105 = arith.constant 0 : index
    %155 = vector.load %arg6[%c0_103, %c1_104, %c0_105] : memref<8x8x128xf32, #tpu.memory_space<vmem>>, vector<8x1x128xf32>
    %156 = vector.shape_cast %155 : vector<8x1x128xf32> to vector<8x128xf32>
    %157 = vector.shape_cast %154 : vector<8x128xf32> to vector<8x1x128xf32>
    tpu.vector_store %arg6[%c0_103, %c1_104, %c0_105], %157 {strides = array<i32>} : memref<8x8x128xf32, #tpu.memory_space<vmem>>, vector<8x1x128xf32>,
    %c2_106 = arith.constant 2 : index
    %c0_107 = arith.constant 0 : index
    %c0_108 = arith.constant 0 : index
    %158 = vector.load %arg8[%c2_106, %c0_107, %c0_108] : memref<8x8x512xf32, #tpu.memory_space<vmem>>, vector<1x8x512xf32>
    %159 = vector.shape_cast %158 : vector<1x8x512xf32> to vector<8x512xf32>
    %160 = arith.truncf %154 : vector<8x128xf32> to vector<8x128xbf16>
    %c0_109 = arith.constant 0 : index
    %c0_110 = arith.constant 0 : index
    %161 = vector.load %arg4[%c0_109, %c0_110] : memref<128x512xbf16, #tpu.memory_space<vmem>>, vector<128x512xbf16>
    %cst_111 = arith.constant dense<0.000000e+00> : vector<8x512xf32>
    %162 = tpu.matmul %160, %161, %cst_111 {dimension_numbers = #tpu.dot_dimension_numbers<[1], [0], [0], [1], [0, 0, 1, 1], [], []>} : vector<8x128xbf16>, vector<128x512xbf16>, vector<8x512xf32> -> vector<8x512xf32>
    %163 = arith.addf %159, %162 : vector<8x512xf32>
    %164 = vector.extract_strided_slice %163 {offsets = [0, 0], sizes = [8, 128], strides = [1, 1]} : vector<8x512xf32> to vector<8x128xf32>
    %cst_112 = arith.constant 5.000000e-01 : f32
    %165 = vector.broadcast %cst_112 : f32 to vector<8x128xf32>
    %166 = arith.mulf %165, %164 : vector<8x128xf32>
    %167 = math.tanh %166 : vector<8x128xf32>
    %cst_113 = arith.constant 5.000000e-01 : f32
    %168 = vector.broadcast %cst_113 : f32 to vector<8x128xf32>
    %169 = arith.mulf %168, %167 : vector<8x128xf32>
    %cst_114 = arith.constant 5.000000e-01 : f32
    %170 = vector.broadcast %cst_114 : f32 to vector<8x128xf32>
    %171 = arith.addf %169, %170 : vector<8x128xf32>
    %172 = vector.extract_strided_slice %163 {offsets = [0, 128], sizes = [8, 128], strides = [1, 1]} : vector<8x512xf32> to vector<8x128xf32>
    %cst_115 = arith.constant 5.000000e-01 : f32
    %173 = vector.broadcast %cst_115 : f32 to vector<8x128xf32>
    %174 = arith.mulf %173, %172 : vector<8x128xf32>
    %175 = math.tanh %174 : vector<8x128xf32>
    %cst_116 = arith.constant 5.000000e-01 : f32
    %176 = vector.broadcast %cst_116 : f32 to vector<8x128xf32>
    %177 = arith.mulf %176, %175 : vector<8x128xf32>
    %cst_117 = arith.constant 5.000000e-01 : f32
    %178 = vector.broadcast %cst_117 : f32 to vector<8x128xf32>
    %179 = arith.addf %177, %178 : vector<8x128xf32>
    %180 = vector.extract_strided_slice %163 {offsets = [0, 256], sizes = [8, 128], strides = [1, 1]} : vector<8x512xf32> to vector<8x128xf32>
    %181 = math.tanh %180 : vector<8x128xf32>
    %182 = vector.extract_strided_slice %163 {offsets = [0, 384], sizes = [8, 128], strides = [1, 1]} : vector<8x512xf32> to vector<8x128xf32>
    %cst_118 = arith.constant 5.000000e-01 : f32
    %183 = vector.broadcast %cst_118 : f32 to vector<8x128xf32>
    %184 = arith.mulf %183, %182 : vector<8x128xf32>
    %185 = math.tanh %184 : vector<8x128xf32>
    %cst_119 = arith.constant 5.000000e-01 : f32
    %186 = vector.broadcast %cst_119 : f32 to vector<8x128xf32>
    %187 = arith.mulf %186, %185 : vector<8x128xf32>
    %cst_120 = arith.constant 5.000000e-01 : f32
    %188 = vector.broadcast %cst_120 : f32 to vector<8x128xf32>
    %189 = arith.addf %187, %188 : vector<8x128xf32>
    %190 = arith.mulf %179, %152 : vector<8x128xf32>
    %191 = arith.mulf %171, %181 : vector<8x128xf32>
    %192 = arith.addf %190, %191 : vector<8x128xf32>
    %193 = math.tanh %192 : vector<8x128xf32>
    %194 = arith.mulf %189, %193 : vector<8x128xf32>
    %c0_121 = arith.constant 0 : index
    %c2_122 = arith.constant 2 : index
    %c0_123 = arith.constant 0 : index
    %195 = vector.load %arg6[%c0_121, %c2_122, %c0_123] : memref<8x8x128xf32, #tpu.memory_space<vmem>>, vector<8x1x128xf32>
    %196 = vector.shape_cast %195 : vector<8x1x128xf32> to vector<8x128xf32>
    %197 = vector.shape_cast %194 : vector<8x128xf32> to vector<8x1x128xf32>
    tpu.vector_store %arg6[%c0_121, %c2_122, %c0_123], %197 {strides = array<i32>} : memref<8x8x128xf32, #tpu.memory_space<vmem>>, vector<8x1x128xf32>,
    %c3_124 = arith.constant 3 : index
    %c0_125 = arith.constant 0 : index
    %c0_126 = arith.constant 0 : index
    %198 = vector.load %arg8[%c3_124, %c0_125, %c0_126] : memref<8x8x512xf32, #tpu.memory_space<vmem>>, vector<1x8x512xf32>
    %199 = vector.shape_cast %198 : vector<1x8x512xf32> to vector<8x512xf32>
    %200 = arith.truncf %194 : vector<8x128xf32> to vector<8x128xbf16>
    %c0_127 = arith.constant 0 : index
    %c0_128 = arith.constant 0 : index
    %201 = vector.load %arg4[%c0_127, %c0_128] : memref<128x512xbf16, #tpu.memory_space<vmem>>, vector<128x512xbf16>
    %cst_129 = arith.constant dense<0.000000e+00> : vector<8x512xf32>
    %202 = tpu.matmul %200, %201, %cst_129 {dimension_numbers = #tpu.dot_dimension_numbers<[1], [0], [0], [1], [0, 0, 1, 1], [], []>} : vector<8x128xbf16>, vector<128x512xbf16>, vector<8x512xf32> -> vector<8x512xf32>
    %203 = arith.addf %199, %202 : vector<8x512xf32>
    %204 = vector.extract_strided_slice %203 {offsets = [0, 0], sizes = [8, 128], strides = [1, 1]} : vector<8x512xf32> to vector<8x128xf32>
    %cst_130 = arith.constant 5.000000e-01 : f32
    %205 = vector.broadcast %cst_130 : f32 to vector<8x128xf32>
    %206 = arith.mulf %205, %204 : vector<8x128xf32>
    %207 = math.tanh %206 : vector<8x128xf32>
    %cst_131 = arith.constant 5.000000e-01 : f32
    %208 = vector.broadcast %cst_131 : f32 to vector<8x128xf32>
    %209 = arith.mulf %208, %207 : vector<8x128xf32>
    %cst_132 = arith.constant 5.000000e-01 : f32
    %210 = vector.broadcast %cst_132 : f32 to vector<8x128xf32>
    %211 = arith.addf %209, %210 : vector<8x128xf32>
    %212 = vector.extract_strided_slice %203 {offsets = [0, 128], sizes = [8, 128], strides = [1, 1]} : vector<8x512xf32> to vector<8x128xf32>
    %cst_133 = arith.constant 5.000000e-01 : f32
    %213 = vector.broadcast %cst_133 : f32 to vector<8x128xf32>
    %214 = arith.mulf %213, %212 : vector<8x128xf32>
    %215 = math.tanh %214 : vector<8x128xf32>
    %cst_134 = arith.constant 5.000000e-01 : f32
    %216 = vector.broadcast %cst_134 : f32 to vector<8x128xf32>
    %217 = arith.mulf %216, %215 : vector<8x128xf32>
    %cst_135 = arith.constant 5.000000e-01 : f32
    %218 = vector.broadcast %cst_135 : f32 to vector<8x128xf32>
    %219 = arith.addf %217, %218 : vector<8x128xf32>
    %220 = vector.extract_strided_slice %203 {offsets = [0, 256], sizes = [8, 128], strides = [1, 1]} : vector<8x512xf32> to vector<8x128xf32>
    %221 = math.tanh %220 : vector<8x128xf32>
    %222 = vector.extract_strided_slice %203 {offsets = [0, 384], sizes = [8, 128], strides = [1, 1]} : vector<8x512xf32> to vector<8x128xf32>
    %cst_136 = arith.constant 5.000000e-01 : f32
    %223 = vector.broadcast %cst_136 : f32 to vector<8x128xf32>
    %224 = arith.mulf %223, %222 : vector<8x128xf32>
    %225 = math.tanh %224 : vector<8x128xf32>
    %cst_137 = arith.constant 5.000000e-01 : f32
    %226 = vector.broadcast %cst_137 : f32 to vector<8x128xf32>
    %227 = arith.mulf %226, %225 : vector<8x128xf32>
    %cst_138 = arith.constant 5.000000e-01 : f32
    %228 = vector.broadcast %cst_138 : f32 to vector<8x128xf32>
    %229 = arith.addf %227, %228 : vector<8x128xf32>
    %230 = arith.mulf %219, %192 : vector<8x128xf32>
    %231 = arith.mulf %211, %221 : vector<8x128xf32>
    %232 = arith.addf %230, %231 : vector<8x128xf32>
    %233 = math.tanh %232 : vector<8x128xf32>
    %234 = arith.mulf %229, %233 : vector<8x128xf32>
    %c0_139 = arith.constant 0 : index
    %c3_140 = arith.constant 3 : index
    %c0_141 = arith.constant 0 : index
    %235 = vector.load %arg6[%c0_139, %c3_140, %c0_141] : memref<8x8x128xf32, #tpu.memory_space<vmem>>, vector<8x1x128xf32>
    %236 = vector.shape_cast %235 : vector<8x1x128xf32> to vector<8x128xf32>
    %237 = vector.shape_cast %234 : vector<8x128xf32> to vector<8x1x128xf32>
    tpu.vector_store %arg6[%c0_139, %c3_140, %c0_141], %237 {strides = array<i32>} : memref<8x8x128xf32, #tpu.memory_space<vmem>>, vector<8x1x128xf32>,
    %c4_142 = arith.constant 4 : index
    %c0_143 = arith.constant 0 : index
    %c0_144 = arith.constant 0 : index
    %238 = vector.load %arg8[%c4_142, %c0_143, %c0_144] : memref<8x8x512xf32, #tpu.memory_space<vmem>>, vector<1x8x512xf32>
    %239 = vector.shape_cast %238 : vector<1x8x512xf32> to vector<8x512xf32>
    %240 = arith.truncf %234 : vector<8x128xf32> to vector<8x128xbf16>
    %c0_145 = arith.constant 0 : index
    %c0_146 = arith.constant 0 : index
    %241 = vector.load %arg4[%c0_145, %c0_146] : memref<128x512xbf16, #tpu.memory_space<vmem>>, vector<128x512xbf16>
    %cst_147 = arith.constant dense<0.000000e+00> : vector<8x512xf32>
    %242 = tpu.matmul %240, %241, %cst_147 {dimension_numbers = #tpu.dot_dimension_numbers<[1], [0], [0], [1], [0, 0, 1, 1], [], []>} : vector<8x128xbf16>, vector<128x512xbf16>, vector<8x512xf32> -> vector<8x512xf32>
    %243 = arith.addf %239, %242 : vector<8x512xf32>
    %244 = vector.extract_strided_slice %243 {offsets = [0, 0], sizes = [8, 128], strides = [1, 1]} : vector<8x512xf32> to vector<8x128xf32>
    %cst_148 = arith.constant 5.000000e-01 : f32
    %245 = vector.broadcast %cst_148 : f32 to vector<8x128xf32>
    %246 = arith.mulf %245, %244 : vector<8x128xf32>
    %247 = math.tanh %246 : vector<8x128xf32>
    %cst_149 = arith.constant 5.000000e-01 : f32
    %248 = vector.broadcast %cst_149 : f32 to vector<8x128xf32>
    %249 = arith.mulf %248, %247 : vector<8x128xf32>
    %cst_150 = arith.constant 5.000000e-01 : f32
    %250 = vector.broadcast %cst_150 : f32 to vector<8x128xf32>
    %251 = arith.addf %249, %250 : vector<8x128xf32>
    %252 = vector.extract_strided_slice %243 {offsets = [0, 128], sizes = [8, 128], strides = [1, 1]} : vector<8x512xf32> to vector<8x128xf32>
    %cst_151 = arith.constant 5.000000e-01 : f32
    %253 = vector.broadcast %cst_151 : f32 to vector<8x128xf32>
    %254 = arith.mulf %253, %252 : vector<8x128xf32>
    %255 = math.tanh %254 : vector<8x128xf32>
    %cst_152 = arith.constant 5.000000e-01 : f32
    %256 = vector.broadcast %cst_152 : f32 to vector<8x128xf32>
    %257 = arith.mulf %256, %255 : vector<8x128xf32>
    %cst_153 = arith.constant 5.000000e-01 : f32
    %258 = vector.broadcast %cst_153 : f32 to vector<8x128xf32>
    %259 = arith.addf %257, %258 : vector<8x128xf32>
    %260 = vector.extract_strided_slice %243 {offsets = [0, 256], sizes = [8, 128], strides = [1, 1]} : vector<8x512xf32> to vector<8x128xf32>
    %261 = math.tanh %260 : vector<8x128xf32>
    %262 = vector.extract_strided_slice %243 {offsets = [0, 384], sizes = [8, 128], strides = [1, 1]} : vector<8x512xf32> to vector<8x128xf32>
    %cst_154 = arith.constant 5.000000e-01 : f32
    %263 = vector.broadcast %cst_154 : f32 to vector<8x128xf32>
    %264 = arith.mulf %263, %262 : vector<8x128xf32>
    %265 = math.tanh %264 : vector<8x128xf32>
    %cst_155 = arith.constant 5.000000e-01 : f32
    %266 = vector.broadcast %cst_155 : f32 to vector<8x128xf32>
    %267 = arith.mulf %266, %265 : vector<8x128xf32>
    %cst_156 = arith.constant 5.000000e-01 : f32
    %268 = vector.broadcast %cst_156 : f32 to vector<8x128xf32>
    %269 = arith.addf %267, %268 : vector<8x128xf32>
    %270 = arith.mulf %259, %232 : vector<8x128xf32>
    %271 = arith.mulf %251, %261 : vector<8x128xf32>
    %272 = arith.addf %270, %271 : vector<8x128xf32>
    %273 = math.tanh %272 : vector<8x128xf32>
    %274 = arith.mulf %269, %273 : vector<8x128xf32>
    %c0_157 = arith.constant 0 : index
    %c4_158 = arith.constant 4 : index
    %c0_159 = arith.constant 0 : index
    %275 = vector.load %arg6[%c0_157, %c4_158, %c0_159] : memref<8x8x128xf32, #tpu.memory_space<vmem>>, vector<8x1x128xf32>
    %276 = vector.shape_cast %275 : vector<8x1x128xf32> to vector<8x128xf32>
    %277 = vector.shape_cast %274 : vector<8x128xf32> to vector<8x1x128xf32>
    tpu.vector_store %arg6[%c0_157, %c4_158, %c0_159], %277 {strides = array<i32>} : memref<8x8x128xf32, #tpu.memory_space<vmem>>, vector<8x1x128xf32>,
    %c5_160 = arith.constant 5 : index
    %c0_161 = arith.constant 0 : index
    %c0_162 = arith.constant 0 : index
    %278 = vector.load %arg8[%c5_160, %c0_161, %c0_162] : memref<8x8x512xf32, #tpu.memory_space<vmem>>, vector<1x8x512xf32>
    %279 = vector.shape_cast %278 : vector<1x8x512xf32> to vector<8x512xf32>
    %280 = arith.truncf %274 : vector<8x128xf32> to vector<8x128xbf16>
    %c0_163 = arith.constant 0 : index
    %c0_164 = arith.constant 0 : index
    %281 = vector.load %arg4[%c0_163, %c0_164] : memref<128x512xbf16, #tpu.memory_space<vmem>>, vector<128x512xbf16>
    %cst_165 = arith.constant dense<0.000000e+00> : vector<8x512xf32>
    %282 = tpu.matmul %280, %281, %cst_165 {dimension_numbers = #tpu.dot_dimension_numbers<[1], [0], [0], [1], [0, 0, 1, 1], [], []>} : vector<8x128xbf16>, vector<128x512xbf16>, vector<8x512xf32> -> vector<8x512xf32>
    %283 = arith.addf %279, %282 : vector<8x512xf32>
    %284 = vector.extract_strided_slice %283 {offsets = [0, 0], sizes = [8, 128], strides = [1, 1]} : vector<8x512xf32> to vector<8x128xf32>
    %cst_166 = arith.constant 5.000000e-01 : f32
    %285 = vector.broadcast %cst_166 : f32 to vector<8x128xf32>
    %286 = arith.mulf %285, %284 : vector<8x128xf32>
    %287 = math.tanh %286 : vector<8x128xf32>
    %cst_167 = arith.constant 5.000000e-01 : f32
    %288 = vector.broadcast %cst_167 : f32 to vector<8x128xf32>
    %289 = arith.mulf %288, %287 : vector<8x128xf32>
    %cst_168 = arith.constant 5.000000e-01 : f32
    %290 = vector.broadcast %cst_168 : f32 to vector<8x128xf32>
    %291 = arith.addf %289, %290 : vector<8x128xf32>
    %292 = vector.extract_strided_slice %283 {offsets = [0, 128], sizes = [8, 128], strides = [1, 1]} : vector<8x512xf32> to vector<8x128xf32>
    %cst_169 = arith.constant 5.000000e-01 : f32
    %293 = vector.broadcast %cst_169 : f32 to vector<8x128xf32>
    %294 = arith.mulf %293, %292 : vector<8x128xf32>
    %295 = math.tanh %294 : vector<8x128xf32>
    %cst_170 = arith.constant 5.000000e-01 : f32
    %296 = vector.broadcast %cst_170 : f32 to vector<8x128xf32>
    %297 = arith.mulf %296, %295 : vector<8x128xf32>
    %cst_171 = arith.constant 5.000000e-01 : f32
    %298 = vector.broadcast %cst_171 : f32 to vector<8x128xf32>
    %299 = arith.addf %297, %298 : vector<8x128xf32>
    %300 = vector.extract_strided_slice %283 {offsets = [0, 256], sizes = [8, 128], strides = [1, 1]} : vector<8x512xf32> to vector<8x128xf32>
    %301 = math.tanh %300 : vector<8x128xf32>
    %302 = vector.extract_strided_slice %283 {offsets = [0, 384], sizes = [8, 128], strides = [1, 1]} : vector<8x512xf32> to vector<8x128xf32>
    %cst_172 = arith.constant 5.000000e-01 : f32
    %303 = vector.broadcast %cst_172 : f32 to vector<8x128xf32>
    %304 = arith.mulf %303, %302 : vector<8x128xf32>
    %305 = math.tanh %304 : vector<8x128xf32>
    %cst_173 = arith.constant 5.000000e-01 : f32
    %306 = vector.broadcast %cst_173 : f32 to vector<8x128xf32>
    %307 = arith.mulf %306, %305 : vector<8x128xf32>
    %cst_174 = arith.constant 5.000000e-01 : f32
    %308 = vector.broadcast %cst_174 : f32 to vector<8x128xf32>
    %309 = arith.addf %307, %308 : vector<8x128xf32>
    %310 = arith.mulf %299, %272 : vector<8x128xf32>
    %311 = arith.mulf %291, %301 : vector<8x128xf32>
    %312 = arith.addf %310, %311 : vector<8x128xf32>
    %313 = math.tanh %312 : vector<8x128xf32>
    %314 = arith.mulf %309, %313 : vector<8x128xf32>
    %c0_175 = arith.constant 0 : index
    %c5_176 = arith.constant 5 : index
    %c0_177 = arith.constant 0 : index
    %315 = vector.load %arg6[%c0_175, %c5_176, %c0_177] : memref<8x8x128xf32, #tpu.memory_space<vmem>>, vector<8x1x128xf32>
    %316 = vector.shape_cast %315 : vector<8x1x128xf32> to vector<8x128xf32>
    %317 = vector.shape_cast %314 : vector<8x128xf32> to vector<8x1x128xf32>
    tpu.vector_store %arg6[%c0_175, %c5_176, %c0_177], %317 {strides = array<i32>} : memref<8x8x128xf32, #tpu.memory_space<vmem>>, vector<8x1x128xf32>,
    %c6_178 = arith.constant 6 : index
    %c0_179 = arith.constant 0 : index
    %c0_180 = arith.constant 0 : index
    %318 = vector.load %arg8[%c6_178, %c0_179, %c0_180] : memref<8x8x512xf32, #tpu.memory_space<vmem>>, vector<1x8x512xf32>
    %319 = vector.shape_cast %318 : vector<1x8x512xf32> to vector<8x512xf32>
    %320 = arith.truncf %314 : vector<8x128xf32> to vector<8x128xbf16>
    %c0_181 = arith.constant 0 : index
    %c0_182 = arith.constant 0 : index
    %321 = vector.load %arg4[%c0_181, %c0_182] : memref<128x512xbf16, #tpu.memory_space<vmem>>, vector<128x512xbf16>
    %cst_183 = arith.constant dense<0.000000e+00> : vector<8x512xf32>
    %322 = tpu.matmul %320, %321, %cst_183 {dimension_numbers = #tpu.dot_dimension_numbers<[1], [0], [0], [1], [0, 0, 1, 1], [], []>} : vector<8x128xbf16>, vector<128x512xbf16>, vector<8x512xf32> -> vector<8x512xf32>
    %323 = arith.addf %319, %322 : vector<8x512xf32>
    %324 = vector.extract_strided_slice %323 {offsets = [0, 0], sizes = [8, 128], strides = [1, 1]} : vector<8x512xf32> to vector<8x128xf32>
    %cst_184 = arith.constant 5.000000e-01 : f32
    %325 = vector.broadcast %cst_184 : f32 to vector<8x128xf32>
    %326 = arith.mulf %325, %324 : vector<8x128xf32>
    %327 = math.tanh %326 : vector<8x128xf32>
    %cst_185 = arith.constant 5.000000e-01 : f32
    %328 = vector.broadcast %cst_185 : f32 to vector<8x128xf32>
    %329 = arith.mulf %328, %327 : vector<8x128xf32>
    %cst_186 = arith.constant 5.000000e-01 : f32
    %330 = vector.broadcast %cst_186 : f32 to vector<8x128xf32>
    %331 = arith.addf %329, %330 : vector<8x128xf32>
    %332 = vector.extract_strided_slice %323 {offsets = [0, 128], sizes = [8, 128], strides = [1, 1]} : vector<8x512xf32> to vector<8x128xf32>
    %cst_187 = arith.constant 5.000000e-01 : f32
    %333 = vector.broadcast %cst_187 : f32 to vector<8x128xf32>
    %334 = arith.mulf %333, %332 : vector<8x128xf32>
    %335 = math.tanh %334 : vector<8x128xf32>
    %cst_188 = arith.constant 5.000000e-01 : f32
    %336 = vector.broadcast %cst_188 : f32 to vector<8x128xf32>
    %337 = arith.mulf %336, %335 : vector<8x128xf32>
    %cst_189 = arith.constant 5.000000e-01 : f32
    %338 = vector.broadcast %cst_189 : f32 to vector<8x128xf32>
    %339 = arith.addf %337, %338 : vector<8x128xf32>
    %340 = vector.extract_strided_slice %323 {offsets = [0, 256], sizes = [8, 128], strides = [1, 1]} : vector<8x512xf32> to vector<8x128xf32>
    %341 = math.tanh %340 : vector<8x128xf32>
    %342 = vector.extract_strided_slice %323 {offsets = [0, 384], sizes = [8, 128], strides = [1, 1]} : vector<8x512xf32> to vector<8x128xf32>
    %cst_190 = arith.constant 5.000000e-01 : f32
    %343 = vector.broadcast %cst_190 : f32 to vector<8x128xf32>
    %344 = arith.mulf %343, %342 : vector<8x128xf32>
    %345 = math.tanh %344 : vector<8x128xf32>
    %cst_191 = arith.constant 5.000000e-01 : f32
    %346 = vector.broadcast %cst_191 : f32 to vector<8x128xf32>
    %347 = arith.mulf %346, %345 : vector<8x128xf32>
    %cst_192 = arith.constant 5.000000e-01 : f32
    %348 = vector.broadcast %cst_192 : f32 to vector<8x128xf32>
    %349 = arith.addf %347, %348 : vector<8x128xf32>
    %350 = arith.mulf %339, %312 : vector<8x128xf32>
    %351 = arith.mulf %331, %341 : vector<8x128xf32>
    %352 = arith.addf %350, %351 : vector<8x128xf32>
    %353 = math.tanh %352 : vector<8x128xf32>
    %354 = arith.mulf %349, %353 : vector<8x128xf32>
    %c0_193 = arith.constant 0 : index
    %c6_194 = arith.constant 6 : index
    %c0_195 = arith.constant 0 : index
    %355 = vector.load %arg6[%c0_193, %c6_194, %c0_195] : memref<8x8x128xf32, #tpu.memory_space<vmem>>, vector<8x1x128xf32>
    %356 = vector.shape_cast %355 : vector<8x1x128xf32> to vector<8x128xf32>
    %357 = vector.shape_cast %354 : vector<8x128xf32> to vector<8x1x128xf32>
    tpu.vector_store %arg6[%c0_193, %c6_194, %c0_195], %357 {strides = array<i32>} : memref<8x8x128xf32, #tpu.memory_space<vmem>>, vector<8x1x128xf32>,
    %c7_196 = arith.constant 7 : index
    %c0_197 = arith.constant 0 : index
    %c0_198 = arith.constant 0 : index
    %358 = vector.load %arg8[%c7_196, %c0_197, %c0_198] : memref<8x8x512xf32, #tpu.memory_space<vmem>>, vector<1x8x512xf32>
    %359 = vector.shape_cast %358 : vector<1x8x512xf32> to vector<8x512xf32>
    %360 = arith.truncf %354 : vector<8x128xf32> to vector<8x128xbf16>
    %c0_199 = arith.constant 0 : index
    %c0_200 = arith.constant 0 : index
    %361 = vector.load %arg4[%c0_199, %c0_200] : memref<128x512xbf16, #tpu.memory_space<vmem>>, vector<128x512xbf16>
    %cst_201 = arith.constant dense<0.000000e+00> : vector<8x512xf32>
    %362 = tpu.matmul %360, %361, %cst_201 {dimension_numbers = #tpu.dot_dimension_numbers<[1], [0], [0], [1], [0, 0, 1, 1], [], []>} : vector<8x128xbf16>, vector<128x512xbf16>, vector<8x512xf32> -> vector<8x512xf32>
    %363 = arith.addf %359, %362 : vector<8x512xf32>
    %364 = vector.extract_strided_slice %363 {offsets = [0, 0], sizes = [8, 128], strides = [1, 1]} : vector<8x512xf32> to vector<8x128xf32>
    %cst_202 = arith.constant 5.000000e-01 : f32
    %365 = vector.broadcast %cst_202 : f32 to vector<8x128xf32>
    %366 = arith.mulf %365, %364 : vector<8x128xf32>
    %367 = math.tanh %366 : vector<8x128xf32>
    %cst_203 = arith.constant 5.000000e-01 : f32
    %368 = vector.broadcast %cst_203 : f32 to vector<8x128xf32>
    %369 = arith.mulf %368, %367 : vector<8x128xf32>
    %cst_204 = arith.constant 5.000000e-01 : f32
    %370 = vector.broadcast %cst_204 : f32 to vector<8x128xf32>
    %371 = arith.addf %369, %370 : vector<8x128xf32>
    %372 = vector.extract_strided_slice %363 {offsets = [0, 128], sizes = [8, 128], strides = [1, 1]} : vector<8x512xf32> to vector<8x128xf32>
    %cst_205 = arith.constant 5.000000e-01 : f32
    %373 = vector.broadcast %cst_205 : f32 to vector<8x128xf32>
    %374 = arith.mulf %373, %372 : vector<8x128xf32>
    %375 = math.tanh %374 : vector<8x128xf32>
    %cst_206 = arith.constant 5.000000e-01 : f32
    %376 = vector.broadcast %cst_206 : f32 to vector<8x128xf32>
    %377 = arith.mulf %376, %375 : vector<8x128xf32>
    %cst_207 = arith.constant 5.000000e-01 : f32
    %378 = vector.broadcast %cst_207 : f32 to vector<8x128xf32>
    %379 = arith.addf %377, %378 : vector<8x128xf32>
    %380 = vector.extract_strided_slice %363 {offsets = [0, 256], sizes = [8, 128], strides = [1, 1]} : vector<8x512xf32> to vector<8x128xf32>
    %381 = math.tanh %380 : vector<8x128xf32>
    %382 = vector.extract_strided_slice %363 {offsets = [0, 384], sizes = [8, 128], strides = [1, 1]} : vector<8x512xf32> to vector<8x128xf32>
    %cst_208 = arith.constant 5.000000e-01 : f32
    %383 = vector.broadcast %cst_208 : f32 to vector<8x128xf32>
    %384 = arith.mulf %383, %382 : vector<8x128xf32>
    %385 = math.tanh %384 : vector<8x128xf32>
    %cst_209 = arith.constant 5.000000e-01 : f32
    %386 = vector.broadcast %cst_209 : f32 to vector<8x128xf32>
    %387 = arith.mulf %386, %385 : vector<8x128xf32>
    %cst_210 = arith.constant 5.000000e-01 : f32
    %388 = vector.broadcast %cst_210 : f32 to vector<8x128xf32>
    %389 = arith.addf %387, %388 : vector<8x128xf32>
    %390 = arith.mulf %379, %352 : vector<8x128xf32>
    %391 = arith.mulf %371, %381 : vector<8x128xf32>
    %392 = arith.addf %390, %391 : vector<8x128xf32>
    %393 = math.tanh %392 : vector<8x128xf32>
    %394 = arith.mulf %389, %393 : vector<8x128xf32>
    %c0_211 = arith.constant 0 : index
    %c7_212 = arith.constant 7 : index
    %c0_213 = arith.constant 0 : index
    %395 = vector.load %arg6[%c0_211, %c7_212, %c0_213] : memref<8x8x128xf32, #tpu.memory_space<vmem>>, vector<8x1x128xf32>
    %396 = vector.shape_cast %395 : vector<8x1x128xf32> to vector<8x128xf32>
    %397 = vector.shape_cast %394 : vector<8x128xf32> to vector<8x1x128xf32>
    tpu.vector_store %arg6[%c0_211, %c7_212, %c0_213], %397 {strides = array<i32>} : memref<8x8x128xf32, #tpu.memory_space<vmem>>, vector<8x1x128xf32>,
    %c0_214 = arith.constant 0 : index
    %c0_215 = arith.constant 0 : index
    %398 = vector.load %arg9[%c0_214, %c0_215] : memref<8x128xf32, #tpu.memory_space<vmem>>, vector<8x128xf32>
    tpu.vector_store %arg9[%c0_214, %c0_215], %394 {strides = array<i32>} : memref<8x128xf32, #tpu.memory_space<vmem>>, vector<8x128xf32>,
    %c0_216 = arith.constant 0 : index
    %c0_217 = arith.constant 0 : index
    %399 = vector.load %arg10[%c0_216, %c0_217] : memref<8x128xf32, #tpu.memory_space<vmem>>, vector<8x128xf32>
    tpu.vector_store %arg10[%c0_216, %c0_217], %392 {strides = array<i32>} : memref<8x128xf32, #tpu.memory_space<vmem>>, vector<8x128xf32>,
    %c0_i32_218 = arith.constant 0 : i32
    %400 = arith.cmpi eq, %arg1, %c0_i32_218 : i32
    %401 = arith.extui %400 : i1 to i32
    %c0_i32_219 = arith.constant 0 : i32
    %402 = arith.cmpi ne, %401, %c0_i32_219 : i32
    scf.if %402 {
      %c0_220 = arith.constant 0 : index
      %c0_221 = arith.constant 0 : index
      %403 = vector.load %arg7[%c0_220, %c0_221] : memref<8x128xf32, #tpu.memory_space<vmem>>, vector<8x128xf32>
      tpu.vector_store %arg7[%c0_220, %c0_221], %392 {strides = array<i32>} : memref<8x128xf32, #tpu.memory_space<vmem>>, vector<8x128xf32>,
    } else {
    }
    return
  }
  func.func @transform_0(%arg0: i32, %arg1: i32) -> (i32, i32, i32) {
    %c0_i32 = arith.constant 0 : i32
    %c0_i32_0 = arith.constant 0 : i32
    return %arg1, %arg0, %c0_i32 : i32, i32, i32
  }
  func.func @transform_1(%arg0: i32, %arg1: i32) -> (i32, i32) {
    %c0_i32 = arith.constant 0 : i32
    %c0_i32_0 = arith.constant 0 : i32
    %c0_i32_1 = arith.constant 0 : i32
    return %c0_i32, %c0_i32_0 : i32, i32
  }
  func.func @transform_2(%arg0: i32, %arg1: i32) -> (i32, i32) {
    %c0_i32 = arith.constant 0 : i32
    %c0_i32_0 = arith.constant 0 : i32
    %c0_i32_1 = arith.constant 0 : i32
    return %c0_i32, %c0_i32_0 : i32, i32
  }
  func.func @transform_3(%arg0: i32, %arg1: i32) -> (i32, i32) {
    %c0_i32 = arith.constant 0 : i32
    %c0_i32_0 = arith.constant 0 : i32
    %c0_i32_1 = arith.constant 0 : i32
    return %c0_i32, %c0_i32_0 : i32, i32
  }
  func.func @transform_4(%arg0: i32, %arg1: i32) -> (i32, i32, i32) {
    %c0_i32 = arith.constant 0 : i32
    %c0_i32_0 = arith.constant 0 : i32
    return %arg0, %arg1, %c0_i32 : i32, i32, i32
  }
  func.func @transform_5(%arg0: i32, %arg1: i32) -> (i32, i32) {
    %c0_i32 = arith.constant 0 : i32
    %c0_i32_0 = arith.constant 0 : i32
    return %arg0, %c0_i32 : i32, i32
  }
}

</mosaic_0001>

<bundles_post_ra>
// kernel: encoder_forward.1
= control target key start
LH: loop header
LB: loop body
LE: loop exit
PB: predicated region body
PF: predicated region fallthrough
CT: control target
= control target key end

     0   :  { %v6560_v1 = vmov 0   ;;  %vm145_vm0 = vcmask 523264   ;;  %v5194_v57 = vmov 0.0|0.0   ;;  %s6554_s1 = inlined_call_operand.vmem [shape: bf16[64,512], index: 1, kind: input, shape index: {}]   ;;  %s6555_s2 = inlined_call_operand.vmem [shape: bf16[128,512], index: 2, kind: input, shape index: {}]   ;;  %s6556_s0 = inlined_call_operand.vmem [shape: bf16[8,8,64], index: 0, kind: input, shape index: {}]   ;;  %s6557_s3 = inlined_call_operand.vmem [shape: f32[1,512], index: 3, kind: input, shape index: {}]   ;;  %s6558_s4 = inlined_call_operand.vmem [shape: f32[8,8,128], index: 4, kind: output, shape index: {0}]   ;;  %s6559_s5 = inlined_call_operand.vmem [shape: f32[8,128], index: 5, kind: output, shape index: {1}]  }
   0x1   :  { %v5229_v0 = vld [vmem:[%s6554_s1 + $0x64] ss:$16 sps:$4 sm:$0xff]   ;;  %181 = vmatprep.mubr.bf16.mxu0 %v6560_v1  ;;  %222 = vmatprep.mubr.bf16.mxu1 %v6560_v1  ;;  %v5236_v2 = vld [vmem:[%s6554_s1 + $0x6c] ss:$16 sps:$4 sm:$0xff]   ;;  %v5242_v3 = vld [vmem:[%s6554_s1 + $0x60] ss:$16 sps:$4 sm:$0xff]  }
   0x2   :  { %157 = vmatprep.subr.bf16.mxu0 %v5229_v0  ;;  %v5247_v4 = vld [vmem:[%s6554_s1 + $0x68] ss:$16 sps:$4 sm:$0xff]   ;;  %198 = vmatprep.subr.bf16.mxu1 %v5236_v2  ;;  %v5253_v5 = vld [vmem:[%s6554_s1 + $0x44] ss:$16 sps:$4 sm:$0xff]   ;;  %v5260_v6 = vld [vmem:[%s6554_s1 + $0x4c] ss:$16 sps:$4 sm:$0xff]  }
   0x3   :  { %158 = vmatpush1.bf16.msra.mxu0 %v5242_v3  ;;  %199 = vmatpush1.bf16.msra.mxu1 %v5247_v4  ;;  %v5265_v7 = vld [vmem:[%s6554_s1 + $0x40] ss:$16 sps:$4 sm:$0xff]   ;;  %v5271_v8 = vld [vmem:[%s6554_s1 + $0x48] ss:$16 sps:$4 sm:$0xff]   ;;  %v5277_v9 = vld [vmem:[%s6554_s1 + $0x24] ss:$16 sps:$4 sm:$0xff]  }
   0x4   :  { %159 = vmatprep.subr.bf16.mxu0 %v5253_v5  ;;  %200 = vmatprep.subr.bf16.mxu1 %v5260_v6  ;;  %v5282_v10 = vld [vmem:[%s6554_s1 + $0x2c] ss:$16 sps:$4 sm:$0xff]   ;;  %v5287_v11 = vld [vmem:[%s6554_s1 + $0x20] ss:$16 sps:$4 sm:$0xff]   ;;  %v5292_v12 = vld [vmem:[%s6554_s1 + $0x28] ss:$16 sps:$4 sm:$0xff]  }
   0x5   :  { %v5299_v13 = vld [vmem:[%s6554_s1 + $0x4] ss:$16 sps:$4 sm:$0xff]   ;;  %v5306_v14 = vld [vmem:[%s6554_s1 + $0xc] ss:$16 sps:$4 sm:$0xff]   ;;  %v5313_v15 = vld [vmem:[%s6554_s1] ss:$16 sps:$4 sm:$0xff]  }
   0x6   :  { %v5318_v16 = vld [vmem:[%s6554_s1 + $0x8] ss:$16 sps:$4 sm:$0xff]   ;;  %v27_v17 = vld [vmem:[%s6556_s0] sm:$0xf]  ;;  %v4521_v18 = vld [vmem:[%s6556_s0 + $0x4] sm:$0xf] }
   0x7   :  { %160 = vmatpush1.bf16.msra.mxu0 %v5265_v7  ;;  %201 = vmatpush1.bf16.msra.mxu1 %v5271_v8  ;;  %v4540_v19 = vld [vmem:[%s6556_s0 + $0x8] sm:$0xf]  ;;  %v4559_v20 = vld [vmem:[%s6556_s0 + $0xc] sm:$0xf]  ;;  %v4578_v21 = vld [vmem:[%s6556_s0 + $0x10] sm:$0xf] }
   0x8   :  { %161 = vmatprep.subr.bf16.mxu0 %v5277_v9  ;;  %202 = vmatprep.subr.bf16.mxu1 %v5282_v10  ;;  %v4597_v22 = vld [vmem:[%s6556_s0 + $0x14] sm:$0xf]  ;;  %v4616_v23 = vld [vmem:[%s6556_s0 + $0x18] sm:$0xf]  ;;  %v5491_v25 = vld [vmem:[%s6555_s2 + $0xec] ss:$16 sps:$4 sm:$0xff]  }
   0x9   :  { %v5486_v24 = vld [vmem:[%s6555_s2 + $0xe4] ss:$16 sps:$4 sm:$0xff]   ;;  %v4635_v26 = vld [vmem:[%s6556_s0 + $0x1c] sm:$0xf]  ;;  %v5501_v27 = vld [vmem:[%s6555_s2 + $0xe0] ss:$16 sps:$4 sm:$0xff]  }
   0xa   :  { %v5506_v28 = vld [vmem:[%s6555_s2 + $0xe8] ss:$16 sps:$4 sm:$0xff]   ;;  %v5513_v29 = vld [vmem:[%s6555_s2 + $0xc4] ss:$16 sps:$4 sm:$0xff]   ;;  %v5518_v30 = vld [vmem:[%s6555_s2 + $0xcc] ss:$16 sps:$4 sm:$0xff]  }
   0xb   :  { %162 = vmatpush1.bf16.msra.mxu0 %v5287_v11  ;;  %203 = vmatpush1.bf16.msra.mxu1 %v5292_v12  ;;  %v5527_v31 = vld [vmem:[%s6555_s2 + $0xc0] ss:$16 sps:$4 sm:$0xff]   ;;  %v5532_v32 = vld [vmem:[%s6555_s2 + $0xc8] ss:$16 sps:$4 sm:$0xff]   ;;  %v5539_v33 = vld [vmem:[%s6555_s2 + $0xa4] ss:$16 sps:$4 sm:$0xff]  }
   0xc   :  { %163 = vmatprep.subr.bf16.mxu0 %v5299_v13  ;;  %204 = vmatprep.subr.bf16.mxu1 %v5306_v14  ;;  %v5544_v34 = vld [vmem:[%s6555_s2 + $0xac] ss:$16 sps:$4 sm:$0xff]   ;;  %v5553_v35 = vld [vmem:[%s6555_s2 + $0xa0] ss:$16 sps:$4 sm:$0xff]   ;;  %v5558_v36 = vld [vmem:[%s6555_s2 + $0xa8] ss:$16 sps:$4 sm:$0xff]  }
   0xd   :  { %v5565_v37 = vld [vmem:[%s6555_s2 + $0x84] ss:$16 sps:$4 sm:$0xff]   ;;  %v5570_v38 = vld [vmem:[%s6555_s2 + $0x8c] ss:$16 sps:$4 sm:$0xff]   ;;  %v5577_v39 = vld [vmem:[%s6555_s2 + $0x80] ss:$16 sps:$4 sm:$0xff]  }
   0xe   :  { %v5582_v40 = vld [vmem:[%s6555_s2 + $0x88] ss:$16 sps:$4 sm:$0xff]   ;;  %v5589_v41 = vld [vmem:[%s6555_s2 + $0x64] ss:$16 sps:$4 sm:$0xff]   ;;  %v5594_v42 = vld [vmem:[%s6555_s2 + $0x6c] ss:$16 sps:$4 sm:$0xff]  }
   0xf   :  { %164 = vmatpush1.bf16.msra.mxu0 %v5313_v15  ;;  %205 = vmatpush1.bf16.msra.mxu1 %v5318_v16  ;;  %v5601_v43 = vld [vmem:[%s6555_s2 + $0x60] ss:$16 sps:$4 sm:$0xff]   ;;  %v5606_v44 = vld [vmem:[%s6555_s2 + $0x68] ss:$16 sps:$4 sm:$0xff]   ;;  %v5613_v45 = vld [vmem:[%s6555_s2 + $0x44] ss:$16 sps:$4 sm:$0xff]  }
  0x10   :  { %344 = vmatprep.subr.bf16.mxu0 %v5229_v0  ;;  %385 = vmatprep.subr.bf16.mxu1 %v5236_v2  ;;  %v5618_v46 = vld [vmem:[%s6555_s2 + $0x4c] ss:$16 sps:$4 sm:$0xff]   ;;  %v5625_v47 = vld [vmem:[%s6555_s2 + $0x40] ss:$16 sps:$4 sm:$0xff]   ;;  %v5630_v48 = vld [vmem:[%s6555_s2 + $0x48] ss:$16 sps:$4 sm:$0xff]  }
  0x11   :  { %v5637_v49 = vld [vmem:[%s6555_s2 + $0x24] ss:$16 sps:$4 sm:$0xff]   ;;  %v5642_v50 = vld [vmem:[%s6555_s2 + $0x2c] ss:$16 sps:$4 sm:$0xff]   ;;  %v5649_v51 = vld [vmem:[%s6555_s2 + $0x20] ss:$16 sps:$4 sm:$0xff]  }
  0x12   :  { %4519 = vmatmul.mubr.msk.bf16.vlgmr.msra.gmra.mxu0 %vm145_vm0, %v27_v17  ;;  %4520 = vmatmul.mubr.msk.bf16.vlgmr.msra.gmra.mxu1 %vm145_vm0, %v27_v17  ;;  %v5654_v52 = vld [vmem:[%s6555_s2 + $0x28] ss:$16 sps:$4 sm:$0xff]   ;;  %v5661_v53 = vld [vmem:[%s6555_s2 + $0x4] ss:$16 sps:$4 sm:$0xff]   ;;  %v5666_v54 = vld [vmem:[%s6555_s2 + $0xc] ss:$16 sps:$4 sm:$0xff]  }
  0x13   :  { %345 = vmatpush1.bf16.msra.mxu0 %v5242_v3  ;;  %386 = vmatpush1.bf16.msra.mxu1 %v5247_v4  ;;  %v5673_v55 = vld [vmem:[%s6555_s2] ss:$16 sps:$4 sm:$0xff]   ;;  %v5678_v56 = vld [vmem:[%s6555_s2 + $0x8] ss:$16 sps:$4 sm:$0xff]  }
  0x14   :  { %346 = vmatprep.subr.bf16.mxu0 %v5253_v5  ;;  %387 = vmatprep.subr.bf16.mxu1 %v5260_v6 }
  0x15   :  { %368 = vmatprep.mubr.bf16.mxu0 %v6560_v1  ;;  %409 = vmatprep.mubr.bf16.mxu1 %v6560_v1 }
  0x17   :  { %347 = vmatpush1.bf16.msra.mxu0 %v5265_v7  ;;  %388 = vmatpush1.bf16.msra.mxu1 %v5271_v8 }
  0x18   :  { %348 = vmatprep.subr.bf16.mxu0 %v5277_v9  ;;  %389 = vmatprep.subr.bf16.mxu1 %v5282_v10 }
  0x1b   :  { %349 = vmatpush1.bf16.msra.mxu0 %v5287_v11  ;;  %390 = vmatpush1.bf16.msra.mxu1 %v5292_v12 }
  0x1c   :  { %350 = vmatprep.subr.bf16.mxu0 %v5299_v13  ;;  %391 = vmatprep.subr.bf16.mxu1 %v5306_v14 }
  0x1f   :  { %351 = vmatpush1.bf16.msra.mxu0 %v5313_v15  ;;  %392 = vmatpush1.bf16.msra.mxu1 %v5318_v16 }
  0x20   :  { %532 = vmatprep.subr.bf16.mxu0 %v5229_v0  ;;  %573 = vmatprep.subr.bf16.mxu1 %v5236_v2 }
  0x22   :  { %4538 = vmatmul.mubr.msk.bf16.vlgmr.msra.gmra.mxu0 %vm145_vm0, %v4521_v18  ;;  %4539 = vmatmul.mubr.msk.bf16.vlgmr.msra.gmra.mxu1 %vm145_vm0, %v4521_v18 }
  0x23   :  { %533 = vmatpush1.bf16.msra.mxu0 %v5242_v3  ;;  %574 = vmatpush1.bf16.msra.mxu1 %v5247_v4 }
  0x24   :  { %534 = vmatprep.subr.bf16.mxu0 %v5253_v5  ;;  %575 = vmatprep.subr.bf16.mxu1 %v5260_v6 }
  0x25   :  { %556 = vmatprep.mubr.bf16.mxu0 %v6560_v1  ;;  %597 = vmatprep.mubr.bf16.mxu1 %v6560_v1 }
  0x27   :  { %535 = vmatpush1.bf16.msra.mxu0 %v5265_v7  ;;  %576 = vmatpush1.bf16.msra.mxu1 %v5271_v8 }
  0x28   :  { %536 = vmatprep.subr.bf16.mxu0 %v5277_v9  ;;  %577 = vmatprep.subr.bf16.mxu1 %v5282_v10 }
  0x2b   :  { %537 = vmatpush1.bf16.msra.mxu0 %v5287_v11  ;;  %578 = vmatpush1.bf16.msra.mxu1 %v5292_v12 }
  0x2c   :  { %538 = vmatprep.subr.bf16.mxu0 %v5299_v13  ;;  %579 = vmatprep.subr.bf16.mxu1 %v5306_v14 }
  0x2f   :  { %539 = vmatpush1.bf16.msra.mxu0 %v5313_v15  ;;  %580 = vmatpush1.bf16.msra.mxu1 %v5318_v16 }
  0x30   :  { %720 = vmatprep.subr.bf16.mxu0 %v5229_v0  ;;  %761 = vmatprep.subr.bf16.mxu1 %v5236_v2 }
  0x32   :  { %4557 = vmatmul.mubr.msk.bf16.vlgmr.msra.gmra.mxu0 %vm145_vm0, %v4540_v19  ;;  %4558 = vmatmul.mubr.msk.bf16.vlgmr.msra.gmra.mxu1 %vm145_vm0, %v4540_v19 }
  0x33   :  { %721 = vmatpush1.bf16.msra.mxu0 %v5242_v3  ;;  %762 = vmatpush1.bf16.msra.mxu1 %v5247_v4 }
  0x34   :  { %722 = vmatprep.subr.bf16.mxu0 %v5253_v5  ;;  %763 = vmatprep.subr.bf16.mxu1 %v5260_v6 }
  0x35   :  { %744 = vmatprep.mubr.bf16.mxu0 %v6560_v1  ;;  %785 = vmatprep.mubr.bf16.mxu1 %v6560_v1 }
  0x37   :  { %723 = vmatpush1.bf16.msra.mxu0 %v5265_v7  ;;  %764 = vmatpush1.bf16.msra.mxu1 %v5271_v8 }
  0x38   :  { %724 = vmatprep.subr.bf16.mxu0 %v5277_v9  ;;  %765 = vmatprep.subr.bf16.mxu1 %v5282_v10 }
  0x3b   :  { %725 = vmatpush1.bf16.msra.mxu0 %v5287_v11  ;;  %766 = vmatpush1.bf16.msra.mxu1 %v5292_v12 }
  0x3c   :  { %726 = vmatprep.subr.bf16.mxu0 %v5299_v13  ;;  %767 = vmatprep.subr.bf16.mxu1 %v5306_v14 }
  0x3f   :  { %727 = vmatpush1.bf16.msra.mxu0 %v5313_v15  ;;  %768 = vmatpush1.bf16.msra.mxu1 %v5318_v16 }
  0x40   :  { %908 = vmatprep.subr.bf16.mxu0 %v5229_v0  ;;  %949 = vmatprep.subr.bf16.mxu1 %v5236_v2 }
  0x42   :  { %4576 = vmatmul.mubr.msk.bf16.vlgmr.msra.gmra.mxu0 %vm145_vm0, %v4559_v20  ;;  %4577 = vmatmul.mubr.msk.bf16.vlgmr.msra.gmra.mxu1 %vm145_vm0, %v4559_v20 }
  0x43   :  { %909 = vmatpush1.bf16.msra.mxu0 %v5242_v3  ;;  %950 = vmatpush1.bf16.msra.mxu1 %v5247_v4 }
  0x44   :  { %910 = vmatprep.subr.bf16.mxu0 %v5253_v5  ;;  %951 = vmatprep.subr.bf16.mxu1 %v5260_v6 }
  0x45   :  { %932 = vmatprep.mubr.bf16.mxu0 %v6560_v1  ;;  %973 = vmatprep.mubr.bf16.mxu1 %v6560_v1 }
  0x47   :  { %911 = vmatpush1.bf16.msra.mxu0 %v5265_v7  ;;  %952 = vmatpush1.bf16.msra.mxu1 %v5271_v8 }
  0x48   :  { %912 = vmatprep.subr.bf16.mxu0 %v5277_v9  ;;  %953 = vmatprep.subr.bf16.mxu1 %v5282_v10 }
  0x4b   :  { %913 = vmatpush1.bf16.msra.mxu0 %v5287_v11  ;;  %954 = vmatpush1.bf16.msra.mxu1 %v5292_v12 }
  0x4c   :  { %914 = vmatprep.subr.bf16.mxu0 %v5299_v13  ;;  %955 = vmatprep.subr.bf16.mxu1 %v5306_v14 }
  0x4f   :  { %915 = vmatpush1.bf16.msra.mxu0 %v5313_v15  ;;  %956 = vmatpush1.bf16.msra.mxu1 %v5318_v16 }
  0x50   :  { %1096 = vmatprep.subr.bf16.mxu0 %v5229_v0  ;;  %1137 = vmatprep.subr.bf16.mxu1 %v5236_v2 }
  0x52   :  { %4595 = vmatmul.mubr.msk.bf16.vlgmr.msra.gmra.mxu0 %vm145_vm0, %v4578_v21  ;;  %4596 = vmatmul.mubr.msk.bf16.vlgmr.msra.gmra.mxu1 %vm145_vm0, %v4578_v21 }
  0x53   :  { %1097 = vmatpush1.bf16.msra.mxu0 %v5242_v3  ;;  %1138 = vmatpush1.bf16.msra.mxu1 %v5247_v4 }
  0x54   :  { %1098 = vmatprep.subr.bf16.mxu0 %v5253_v5  ;;  %1139 = vmatprep.subr.bf16.mxu1 %v5260_v6 }
  0x55   :  { %1120 = vmatprep.mubr.bf16.mxu0 %v6560_v1  ;;  %1161 = vmatprep.mubr.bf16.mxu1 %v6560_v1 }
  0x57   :  { %1099 = vmatpush1.bf16.msra.mxu0 %v5265_v7  ;;  %1140 = vmatpush1.bf16.msra.mxu1 %v5271_v8 }
  0x58   :  { %1100 = vmatprep.subr.bf16.mxu0 %v5277_v9  ;;  %1141 = vmatprep.subr.bf16.mxu1 %v5282_v10 }
  0x5b   :  { %1101 = vmatpush1.bf16.msra.mxu0 %v5287_v11  ;;  %1142 = vmatpush1.bf16.msra.mxu1 %v5292_v12 }
  0x5c   :  { %1102 = vmatprep.subr.bf16.mxu0 %v5299_v13  ;;  %1143 = vmatprep.subr.bf16.mxu1 %v5306_v14 }
  0x5f   :  { %1103 = vmatpush1.bf16.msra.mxu0 %v5313_v15  ;;  %1144 = vmatpush1.bf16.msra.mxu1 %v5318_v16 }
  0x60   :  { %1284 = vmatprep.subr.bf16.mxu0 %v5229_v0  ;;  %1325 = vmatprep.subr.bf16.mxu1 %v5236_v2 }
  0x62   :  { %4614 = vmatmul.mubr.msk.bf16.vlgmr.msra.gmra.mxu0 %vm145_vm0, %v4597_v22  ;;  %4615 = vmatmul.mubr.msk.bf16.vlgmr.msra.gmra.mxu1 %vm145_vm0, %v4597_v22 }
  0x63   :  { %1285 = vmatpush1.bf16.msra.mxu0 %v5242_v3  ;;  %1326 = vmatpush1.bf16.msra.mxu1 %v5247_v4 }
  0x64   :  { %1286 = vmatprep.subr.bf16.mxu0 %v5253_v5  ;;  %1327 = vmatprep.subr.bf16.mxu1 %v5260_v6 }
  0x65   :  { %1308 = vmatprep.mubr.bf16.mxu0 %v6560_v1  ;;  %1349 = vmatprep.mubr.bf16.mxu1 %v6560_v1 }
  0x67   :  { %1287 = vmatpush1.bf16.msra.mxu0 %v5265_v7  ;;  %1328 = vmatpush1.bf16.msra.mxu1 %v5271_v8 }
  0x68   :  { %1288 = vmatprep.subr.bf16.mxu0 %v5277_v9  ;;  %1329 = vmatprep.subr.bf16.mxu1 %v5282_v10 }
  0x6b   :  { %1289 = vmatpush1.bf16.msra.mxu0 %v5287_v11  ;;  %1330 = vmatpush1.bf16.msra.mxu1 %v5292_v12 }
  0x6c   :  { %1290 = vmatprep.subr.bf16.mxu0 %v5299_v13  ;;  %1331 = vmatprep.subr.bf16.mxu1 %v5306_v14 }
  0x6f   :  { %1291 = vmatpush1.bf16.msra.mxu0 %v5313_v15  ;;  %1332 = vmatpush1.bf16.msra.mxu1 %v5318_v16 }
  0x70   :  { %1472 = vmatprep.subr.bf16.mxu0 %v5229_v0  ;;  %1513 = vmatprep.subr.bf16.mxu1 %v5236_v2 }
  0x72   :  { %4633 = vmatmul.mubr.msk.bf16.vlgmr.msra.gmra.mxu0 %vm145_vm0, %v4616_v23  ;;  %4634 = vmatmul.mubr.msk.bf16.vlgmr.msra.gmra.mxu1 %vm145_vm0, %v4616_v23 }
  0x73   :  { %1473 = vmatpush1.bf16.msra.mxu0 %v5242_v3  ;;  %1514 = vmatpush1.bf16.msra.mxu1 %v5247_v4 }
  0x74   :  { %1474 = vmatprep.subr.bf16.mxu0 %v5253_v5  ;;  %1515 = vmatprep.subr.bf16.mxu1 %v5260_v6 }
  0x75   :  { %1496 = vmatprep.mubr.bf16.mxu0 %v6560_v1  ;;  %1537 = vmatprep.mubr.bf16.mxu1 %v6560_v1 }
  0x77   :  { %1475 = vmatpush1.bf16.msra.mxu0 %v5265_v7  ;;  %1516 = vmatpush1.bf16.msra.mxu1 %v5271_v8 }
  0x78   :  { %1476 = vmatprep.subr.bf16.mxu0 %v5277_v9  ;;  %1517 = vmatprep.subr.bf16.mxu1 %v5282_v10 }
  0x7b   :  { %1477 = vmatpush1.bf16.msra.mxu0 %v5287_v11  ;;  %1518 = vmatpush1.bf16.msra.mxu1 %v5292_v12 }
  0x7c   :  { %1478 = vmatprep.subr.bf16.mxu0 %v5299_v13  ;;  %1519 = vmatprep.subr.bf16.mxu1 %v5306_v14 }
  0x7f   :  { %1479 = vmatpush1.bf16.msra.mxu0 %v5313_v15  ;;  %1520 = vmatpush1.bf16.msra.mxu1 %v5318_v16 }
  0x80   :  { %1750 = vmatprep.subr.bf16.mxu0 %v5486_v24  ;;  %1791 = vmatprep.subr.bf16.mxu1 %v5491_v25 }
  0x82   :  { %4652 = vmatmul.mubr.msk.bf16.vlgmr.msra.gmra.mxu0 %vm145_vm0, %v4635_v26  ;;  %4653 = vmatmul.mubr.msk.bf16.vlgmr.msra.gmra.mxu1 %vm145_vm0, %v4635_v26 }
  0x83   :  { %1751 = vmatpush1.bf16.msra.mxu0 %v5501_v27  ;;  %1792 = vmatpush1.bf16.msra.mxu1 %v5506_v28 }
  0x84   :  { %1752 = vmatprep.subr.bf16.mxu0 %v5513_v29  ;;  %1793 = vmatprep.subr.bf16.mxu1 %v5518_v30 }
  0x85   :  { %1782 = vmatprep.mubr.bf16.mxu0 %v6560_v1  ;;  %1823 = vmatprep.mubr.bf16.mxu1 %v6560_v1 }
  0x87   :  { %1753 = vmatpush1.bf16.msra.mxu0 %v5527_v31  ;;  %1794 = vmatpush1.bf16.msra.mxu1 %v5532_v32 }
  0x88   :  { %1754 = vmatprep.subr.bf16.mxu0 %v5539_v33  ;;  %1795 = vmatprep.subr.bf16.mxu1 %v5544_v34 }
  0x8b   :  { %1755 = vmatpush1.bf16.msra.mxu0 %v5553_v35  ;;  %1796 = vmatpush1.bf16.msra.mxu1 %v5558_v36 }
  0x8c   :  { %1756 = vmatprep.subr.bf16.mxu0 %v5565_v37  ;;  %1797 = vmatprep.subr.bf16.mxu1 %v5570_v38 }
  0x8f   :  { %1757 = vmatpush1.bf16.msra.mxu0 %v5577_v39  ;;  %1798 = vmatpush1.bf16.msra.mxu1 %v5582_v40 }
  0x90   :  { %1758 = vmatprep.subr.bf16.mxu0 %v5589_v41  ;;  %1799 = vmatprep.subr.bf16.mxu1 %v5594_v42 }
  0x93   :  { %1759 = vmatpush1.bf16.msra.mxu0 %v5601_v43  ;;  %1800 = vmatpush1.bf16.msra.mxu1 %v5606_v44 }
  0x94   :  { %1760 = vmatprep.subr.bf16.mxu0 %v5613_v45  ;;  %1801 = vmatprep.subr.bf16.mxu1 %v5618_v46 }
  0x97   :  { %1761 = vmatpush1.bf16.msra.mxu0 %v5625_v47  ;;  %1802 = vmatpush1.bf16.msra.mxu1 %v5630_v48 }
  0x98   :  { %1762 = vmatprep.subr.bf16.mxu0 %v5637_v49  ;;  %1803 = vmatprep.subr.bf16.mxu1 %v5642_v50 }
  0x9b   :  { %1763 = vmatpush1.bf16.msra.mxu0 %v5649_v51  ;;  %1804 = vmatpush1.bf16.msra.mxu1 %v5654_v52 }
  0x9c   :  { %1764 = vmatprep.subr.bf16.mxu0 %v5661_v53  ;;  %1805 = vmatprep.subr.bf16.mxu1 %v5666_v54 }
  0x9f   :  { %1765 = vmatpush1.bf16.msra.mxu0 %v5673_v55  ;;  %1806 = vmatpush1.bf16.msra.mxu1 %v5678_v56 }
  0xa0   :  { %2117 = vmatprep.subr.bf16.mxu0 %v5486_v24  ;;  %2158 = vmatprep.subr.bf16.mxu1 %v5491_v25 }
  0xa2   :  { %1783 = vmatmul.mubr.bf16.vlgmr.msra.gmra.mxu0 %v5194_v57  ;;  %1824 = vmatmul.mubr.bf16.vlgmr.msra.gmra.mxu1 %v5194_v57 }
  0xa3   :  { %2118 = vmatpush1.bf16.msra.mxu0 %v5501_v27  ;;  %2159 = vmatpush1.bf16.msra.mxu1 %v5506_v28 }
  0xa4   :  { %2119 = vmatprep.subr.bf16.mxu0 %v5513_v29  ;;  %2160 = vmatprep.subr.bf16.mxu1 %v5518_v30 }
  0xa5   :  { %2149 = vmatprep.mubr.bf16.mxu0 %v6560_v1  ;;  %2190 = vmatprep.mubr.bf16.mxu1 %v6560_v1 }
  0xa7   :  { %2120 = vmatpush1.bf16.msra.mxu0 %v5527_v31  ;;  %2161 = vmatpush1.bf16.msra.mxu1 %v5532_v32 }
  0xa8   :  { %2121 = vmatprep.subr.bf16.mxu0 %v5539_v33  ;;  %2162 = vmatprep.subr.bf16.mxu1 %v5544_v34 }
  0xab   :  { %2122 = vmatpush1.bf16.msra.mxu0 %v5553_v35  ;;  %2163 = vmatpush1.bf16.msra.mxu1 %v5558_v36 }
  0xac   :  { %2123 = vmatprep.subr.bf16.mxu0 %v5565_v37  ;;  %2164 = vmatprep.subr.bf16.mxu1 %v5570_v38 }
  0xaf   :  { %2124 = vmatpush1.bf16.msra.mxu0 %v5577_v39  ;;  %2165 = vmatpush1.bf16.msra.mxu1 %v5582_v40 }
  0xb0   :  { %2125 = vmatprep.subr.bf16.mxu0 %v5589_v41  ;;  %2166 = vmatprep.subr.bf16.mxu1 %v5594_v42 }
  0xb3   :  { %2126 = vmatpush1.bf16.msra.mxu0 %v5601_v43  ;;  %2167 = vmatpush1.bf16.msra.mxu1 %v5606_v44 }
  0xb4   :  { %2127 = vmatprep.subr.bf16.mxu0 %v5613_v45  ;;  %2168 = vmatprep.subr.bf16.mxu1 %v5618_v46 }
  0xb7   :  { %2128 = vmatpush1.bf16.msra.mxu0 %v5625_v47  ;;  %2169 = vmatpush1.bf16.msra.mxu1 %v5630_v48 }
  0xb8   :  { %2129 = vmatprep.subr.bf16.mxu0 %v5637_v49  ;;  %2170 = vmatprep.subr.bf16.mxu1 %v5642_v50 }
  0xbb   :  { %2130 = vmatpush1.bf16.msra.mxu0 %v5649_v51  ;;  %2171 = vmatpush1.bf16.msra.mxu1 %v5654_v52 }
  0xbc   :  { %2131 = vmatprep.subr.bf16.mxu0 %v5661_v53  ;;  %2172 = vmatprep.subr.bf16.mxu1 %v5666_v54 }
  0xbf   :  { %2132 = vmatpush1.bf16.msra.mxu0 %v5673_v55  ;;  %2173 = vmatpush1.bf16.msra.mxu1 %v5678_v56 }
  0xc0   :  { %2484 = vmatprep.subr.bf16.mxu0 %v5486_v24  ;;  %2525 = vmatprep.subr.bf16.mxu1 %v5491_v25 }
  0xd2   :  { %v5720_v58 = vpop.f32.mrf.mxu0  ;;  %v5722_v59 = vpop.f32.mrf.mxu1 }
  0xd4   :  { %v5724_v60 = vpop.f32.mrf.mxu0  ;;  %v5726_v61 = vpop.f32.mrf.mxu1 }
  0xd6   :  { %v187_v62 = vpop.f32.mrf.mxu0  ;;  %v228_v63 = vpop.f32.mrf.mxu1 }
  0xd8   :  { %v188_v0 = vpop.f32.mrf.mxu0  ;;  %v229_v2 = vpop.f32.mrf.mxu1 }
  0xe2   :  { %v5728_v3 = vpop.f32.mrf.mxu0  ;;  %v5730_v4 = vpop.f32.mrf.mxu1 }
  0xe4   :  { %v5732_v5 = vpop.f32.mrf.mxu0  ;;  %v5734_v6 = vpop.f32.mrf.mxu1 }
  0xe6   :  { %v374_v7 = vpop.f32.mrf.mxu0  ;;  %v415_v8 = vpop.f32.mrf.mxu1 }
  0xe8   :  { %v375_v9 = vpop.f32.mrf.mxu0  ;;  %v416_v10 = vpop.f32.mrf.mxu1 }
  0xf2   :  { %v5736_v11 = vpop.f32.mrf.mxu0  ;;  %v5738_v12 = vpop.f32.mrf.mxu1 }
  0xf4   :  { %v5740_v13 = vpop.f32.mrf.mxu0  ;;  %v5742_v14 = vpop.f32.mrf.mxu1 }
  0xf5   :  { %6562 = vst [vmem:[#allocation5_spill] sm:$0xff] %v5742_v14 }
  0xf6   :  { %v562_v15 = vpop.f32.mrf.mxu0  ;;  %v603_v16 = vpop.f32.mrf.mxu1 }
  0xf8   :  { %v563_v17 = vpop.f32.mrf.mxu0  ;;  %v604_v18 = vpop.f32.mrf.mxu1 }
 0x102   :  { %v5744_v19 = vpop.f32.mrf.mxu0  ;;  %v5746_v20 = vpop.f32.mrf.mxu1 }
 0x103   :  { %6563 = vst [vmem:[#allocation6_spill] sm:$0xff] %v5744_v19  ;;  %6564 = vst [vmem:[#allocation7_spill] sm:$0xff] %v5746_v20 }
 0x104   :  { %v5748_v21 = vpop.f32.mrf.mxu0  ;;  %v5750_v22 = vpop.f32.mrf.mxu1 }
 0x105   :  { %6565 = vst [vmem:[#allocation8_spill] sm:$0xff] %v5748_v21  ;;  %6566 = vst [vmem:[#allocation9_spill] sm:$0xff] %v5750_v22 }
 0x106   :  { %v750_v23 = vpop.f32.mrf.mxu0  ;;  %v791_v24 = vpop.f32.mrf.mxu1 }
 0x108   :  { %v751_v25 = vpop.f32.mrf.mxu0  ;;  %v792_v26 = vpop.f32.mrf.mxu1 }
 0x112   :  { %v5752_v57 = vpop.f32.mrf.mxu0  ;;  %v5754_v62 = vpop.f32.mrf.mxu1 }
 0x113   :  { %6567 = vst [vmem:[#allocation10_spill] sm:$0xff] %v5752_v57  ;;  %6568 = vst [vmem:[#allocation11_spill] sm:$0xff] %v5754_v62 }
 0x114   :  { %v5756_v63 = vpop.f32.mrf.mxu0  ;;  %v5758_v0 = vpop.f32.mrf.mxu1 }
 0x115   :  { %6569 = vst [vmem:[#allocation12_spill] sm:$0xff] %v5756_v63  ;;  %6570 = vst [vmem:[#allocation13_spill] sm:$0xff] %v5758_v0 }
 0x116   :  { %v938_v2 = vpop.f32.mrf.mxu0  ;;  %v979_v7 = vpop.f32.mrf.mxu1 }
 0x118   :  { %v939_v8 = vpop.f32.mrf.mxu0  ;;  %v980_v9 = vpop.f32.mrf.mxu1 }
 0x122   :  { %v5760_v10 = vpop.f32.mrf.mxu0  ;;  %v5762_v15 = vpop.f32.mrf.mxu1 }
 0x123   :  { %6571 = vst [vmem:[#allocation14_spill] sm:$0xff] %v5760_v10  ;;  %6572 = vst [vmem:[#allocation15_spill] sm:$0xff] %v5762_v15 }
 0x124   :  { %v5764_v16 = vpop.f32.mrf.mxu0  ;;  %v5766_v17 = vpop.f32.mrf.mxu1 }
 0x125   :  { %6573 = vst [vmem:[#allocation16_spill] sm:$0xff] %v5764_v16  ;;  %6574 = vst [vmem:[#allocation17_spill] sm:$0xff] %v5766_v17  ;;  %v45_v17 = vlaneseq }
 0x126   :  { %v1126_v18 = vpop.f32.mrf.mxu0  ;;  %v1167_v23 = vpop.f32.mrf.mxu1 }
 0x128   :  { %v1127_v24 = vpop.f32.mrf.mxu0  ;;  %v1168_v25 = vpop.f32.mrf.mxu1 }
 0x132   :  { %v5768_v26 = vpop.f32.mrf.mxu0  ;;  %v5770_v1 = vpop.f32.mrf.mxu1 }
 0x133   :  { %6575 = vst [vmem:[#allocation18_spill] sm:$0xff] %v5768_v26  ;;  %6576 = vst [vmem:[#allocation19_spill] sm:$0xff] %v5770_v1 }
 0x134   :  { %v5772_v2 = vpop.f32.mrf.mxu0  ;;  %v5774_v7 = vpop.f32.mrf.mxu1 }
 0x135   :  { %6577 = vst [vmem:[#allocation20_spill] sm:$0xff] %v5772_v2  ;;  %6578 = vst [vmem:[#allocation21_spill] sm:$0xff] %v5774_v7  ;;  %v46_v2 = vshrl.u32 %v45_v17, 7 }
 0x136   :  { %v1314_v8 = vpop.f32.mrf.mxu0  ;;  %v1355_v9 = vpop.f32.mrf.mxu1 }
 0x137   :  { %v47_v62 = vsub.s32 0, %v46_v2  ;;  %v55_v9 = vsub.s32 2, %v46_v2  ;;  %v59_v7 = vsub.s32 3, %v46_v2 }
 0x138   :  { %v1315_v10 = vpop.f32.mrf.mxu0  ;;  %v1356_v15 = vpop.f32.mrf.mxu1 }
 0x139   :  { %v26_v10 = vld [vmem:[%s6557_s3] sm:$0xf]  ;;  %v51_v15 = vsub.s32 1, %v46_v2 }
 0x13a   :  { %v5787_v8 = vrot.slane %v26_v10, %v47_v62  ;;  %v5799_v19 = vrot.slane %v26_v10, %v59_v7  ;;  %v5195_v7 = vmov 1966171168  }
 0x142   :  { %v5776_v0 = vpop.f32.mrf.mxu0  ;;  %v5778_v16 = vpop.f32.mrf.mxu1 }
 0x143   :  { %6579 = vst [vmem:[#allocation22_spill] sm:$0xff] %v5776_v0  ;;  %6580 = vst [vmem:[#allocation23_spill] sm:$0xff] %v5778_v16  ;;  %v5789_v16 = vrot.slane %v26_v10, %v51_v15 }
 0x144   :  { %v5780_v18 = vpop.f32.mrf.mxu0  ;;  %v5782_v23 = vpop.f32.mrf.mxu1 }
 0x145   :  { %6581 = vst [vmem:[#allocation24_spill] sm:$0xff] %v5780_v18  ;;  %6582 = vst [vmem:[#allocation25_spill] sm:$0xff] %v5782_v23  ;;  %v184_v23 = vadd.f32 %v5720_v58, %v5787_v8  ;;  %v186_v17 = vadd.f32 %v5724_v60, %v5789_v16  ;;  %v227_v60 = vadd.f32 %v5726_v61, %v5799_v19 }
 0x146   :  { %v1502_v24 = vpop.f32.mrf.mxu0  ;;  %v1543_v25 = vpop.f32.mrf.mxu1 }
 0x147   :  { %v5793_v24 = vrot.slane %v26_v10, %v55_v9  ;;  %v1857_v10 = vunpack.c.l.s4 %v5195_v7 }
 0x148   :  { %v1503_v26 = vpop.f32.mrf.mxu0  ;;  %v1544_v1 = vpop.f32.mrf.mxu1 }
 0x149   :  { %v225_v62 = vadd.f32 %v5722_v59, %v5793_v24 }
 0x162   :  { %v1784_v26 = vpop.f32.mrf.mxu0  ;;  %v1825_v1 = vpop.f32.mrf.mxu1 }
 0x163   :  { %v1832_v25 = vadd.f32 %v1784_v26, %v184_v23  ;;  %v1834_v58 = vadd.f32 %v1825_v1, %v225_v62 }
 0x164   :  { %v1786_v18 = vpop.f32.mrf.mxu0  ;;  %v1827_v0 = vpop.f32.mrf.mxu1 }
 0x165   :  { %v1836_v63 = vmul.f32 0.5, %v1832_v25  ;;  %v1833_v15 = vadd.f32 %v1786_v18, %v186_v17  ;;  %v1835_v23 = vadd.f32 %v1827_v0, %v227_v60  ;;  %v1858_v0 = vunpack.c.0.s8 %v1857_v10 }
 0x166   :  { %v1788_v57 = vpop.f32.mrf.mxu0  ;;  %v1829_v22 = vpop.f32.mrf.mxu1 }
 0x167   :  { %5113 = vtanh.f32 %v1836_v63  ;;  %v1840_v9 = vmul.f32 0.5, %v1833_v15  ;;  %v1845_v26 = vmul.f32 0.5, %v1835_v23  ;;  %v5806_v15 = vsub.s32 %v1858_v0, %v46_v2 }
 0x168   :  { %v1789_v20 = vpop.f32.mrf.mxu0  ;;  %v1830_v21 = vpop.f32.mrf.mxu1 }
 0x169   :  { %5115 = vtanh.f32 %v1840_v9 }
 0x16a   :  { %5117 = vtanh.f32 %v1834_v58 }
 0x16b   :  { %5119 = vtanh.f32 %v1845_v26 }
 0x174   :  { %v5114_v59 = vpop.eup %5113 }
 0x175   :  { %v1838_v14 = vmul.f32 0.5, %v5114_v59 }
 0x176   :  { %v5116_v25 = vpop.eup %5115 }
 0x177   :  { %v1839_v18 = vadd.f32 0.5, %v1838_v14  ;;  %v1842_v57 = vmul.f32 0.5, %v5116_v25  ;;  %v5118_v22 = vpop.eup %5117 }
 0x178   :  { %v5120_v17 = vpop.eup %5119 }
 0x179   :  { %v1843_v63 = vadd.f32 0.5, %v1842_v57  ;;  %v1850_v1 = vmul.f32 %v5118_v22, %v1839_v18  ;;  %v1847_v61 = vmul.f32 0.5, %v5120_v17 }
 0x17b   :  { %v1849_v20 = vmul.f32 0.0, %v1843_v63  ;;  %v1848_v62 = vadd.f32 0.5, %v1847_v61 }
 0x17d   :  { %v5803_v21 = vadd.f32 %v1850_v1, %v1849_v20 }
 0x17f   :  { %5121 = vtanh.f32 %v5803_v21 }
 0x18c   :  { %v5122_v58 = vpop.eup %5121 }
 0x18d   :  { %v1853_v14 = vmul.f32 %v5122_v58, %v1848_v62 }
 0x18f   :  { %v1855_v9 = vcombine.high %v1853_v14, %v1853_v14  ;;  %v1862_v60 = vrot.slane %v1853_v14, %v5806_v15  ;;  %v1924_v23 = vpack.c.bf16 %v1853_v14, %v1853_v14 }
 0x191   :  { %v1869_v26 = vrot.slane %v1855_v9, %v5806_v15  ;;  %v1870_v59 = vcombine.high %v1862_v60, %v1862_v60  ;;  %v1878_v25 = vrot.slane %v1862_v60, %v5806_v15  ;;  %4686 = vst.sshfl [vmem:[%s6558_s4] sm:$0x1 pattern:$0x73625140] %v1862_v60  ;;  %2150 = vmatmul.mubr.bf16.vlgmr.msra.gmra.mxu0 %v1924_v23 }
 0x192   :  { %2191 = vmatmul.mubr.bf16.vlgmr.msra.gmra.mxu1 %v1924_v23  ;;  %2485 = vmatpush1.bf16.msra.mxu0 %v5501_v27  ;;  %v6583_v27 = vmov 0  }
 0x193   :  { %2526 = vmatpush1.bf16.msra.mxu1 %v5506_v28  ;;  %v1871_v2 = vcombine.high %v1869_v26, %v1869_v26  ;;  %v1885_v18 = vrot.slane %v1869_v26, %v5806_v15  ;;  %v1892_v57 = vrot.slane %v1870_v59, %v5806_v15  ;;  %v1900_v22 = vcombine.high %v1878_v25, %v1878_v25 }
 0x194   :  { %4687 = vst.sshfl [vmem:[%s6558_s4 + $0x8] sm:$0x1 pattern:$0x73625140] %v1870_v59  ;;  %2486 = vmatprep.subr.bf16.mxu0 %v5513_v29  ;;  %2527 = vmatprep.subr.bf16.mxu1 %v5518_v30  ;;  %v371_v30 = vadd.f32 %v5728_v3, %v5787_v8 }
 0x195   :  { %4688 = vst.sshfl [vmem:[%s6558_s4 + $0x20] sm:$0x1 pattern:$0x73625140] %v1869_v26  ;;  %2516 = vmatprep.mubr.bf16.mxu0 %v6583_v27  ;;  %v1899_v28 = vrot.slane %v1871_v2, %v5806_v15  ;;  %v1901_v63 = vcombine.high %v1885_v18, %v1885_v18  ;;  %v1902_v1 = vcombine.high %v1892_v57, %v1892_v57  ;;  %1914 = vst [vmem:[%s6558_s4 + $0x10] sm:$0x1] %v1900_v22 }
 0x196   :  { %4689 = vst.sshfl [vmem:[%s6558_s4 + $0x28] sm:$0x1 pattern:$0x73625140] %v1871_v2  ;;  %2557 = vmatprep.mubr.bf16.mxu1 %v6583_v27  ;;  %2487 = vmatpush1.bf16.msra.mxu0 %v5527_v31  ;;  %v5917_v18 = vld [vmem:[%s6555_s2 + $0xe4] ss:$16 sps:$4 sm:$0xff]  }
 0x197   :  { %2528 = vmatpush1.bf16.msra.mxu1 %v5532_v32  ;;  %v1903_v29 = vcombine.high %v1899_v28, %v1899_v28  ;;  %1915 = vst [vmem:[%s6558_s4 + $0x18] sm:$0x1] %v1902_v1  ;;  %1918 = vst [vmem:[%s6558_s4 + $0x30] sm:$0x1] %v1901_v63  ;;  %2488 = vmatprep.subr.bf16.mxu0 %v5539_v33  ;;  %v373_v33 = vadd.f32 %v5732_v5, %v5789_v16  ;;  %v5922_v57 = vld [vmem:[%s6555_s2 + $0xec] ss:$16 sps:$4 sm:$0xff]  }
 0x198   :  { %2529 = vmatprep.subr.bf16.mxu1 %v5544_v34  ;;  %v5927_v22 = vld [vmem:[%s6555_s2 + $0xe0] ss:$16 sps:$4 sm:$0xff]   ;;  %v5932_v28 = vld [vmem:[%s6555_s2 + $0xe8] ss:$16 sps:$4 sm:$0xff]   ;;  %v5941_v63 = vld [vmem:[%s6555_s2 + $0xc4] ss:$16 sps:$4 sm:$0xff]  }
 0x199   :  { %1919 = vst [vmem:[%s6558_s4 + $0x38] sm:$0x1] %v1903_v29  ;;  %v5946_v1 = vld [vmem:[%s6555_s2 + $0xcc] ss:$16 sps:$4 sm:$0xff]   ;;  %v5951_v29 = vld [vmem:[%s6555_s2 + $0xc0] ss:$16 sps:$4 sm:$0xff]  }
 0x19a   :  { %2489 = vmatpush1.bf16.msra.mxu0 %v5553_v35 }
 0x19b   :  { %2530 = vmatpush1.bf16.msra.mxu1 %v5558_v36  ;;  %2490 = vmatprep.subr.bf16.mxu0 %v5565_v37  ;;  %v412_v37 = vadd.f32 %v5730_v4, %v5793_v24 }
 0x19c   :  { %2531 = vmatprep.subr.bf16.mxu1 %v5570_v38 }
 0x19e   :  { %2491 = vmatpush1.bf16.msra.mxu0 %v5577_v39 }
 0x19f   :  { %2532 = vmatpush1.bf16.msra.mxu1 %v5582_v40  ;;  %2492 = vmatprep.subr.bf16.mxu0 %v5589_v41 }
 0x1a0   :  { %2533 = vmatprep.subr.bf16.mxu1 %v5594_v42 }
 0x1a2   :  { %2493 = vmatpush1.bf16.msra.mxu0 %v5601_v43 }
 0x1a3   :  { %2534 = vmatpush1.bf16.msra.mxu1 %v5606_v44  ;;  %2494 = vmatprep.subr.bf16.mxu0 %v5613_v45 }
 0x1a4   :  { %2535 = vmatprep.subr.bf16.mxu1 %v5618_v46  ;;  %v414_v46 = vadd.f32 %v5734_v6, %v5799_v19 }
 0x1a6   :  { %2495 = vmatpush1.bf16.msra.mxu0 %v5625_v47 }
 0x1a7   :  { %2536 = vmatpush1.bf16.msra.mxu1 %v5630_v48  ;;  %2496 = vmatprep.subr.bf16.mxu0 %v5637_v49 }
 0x1a8   :  { %2537 = vmatprep.subr.bf16.mxu1 %v5642_v50 }
 0x1aa   :  { %2497 = vmatpush1.bf16.msra.mxu0 %v5649_v51 }
 0x1ab   :  { %2538 = vmatpush1.bf16.msra.mxu1 %v5654_v52  ;;  %2498 = vmatprep.subr.bf16.mxu0 %v5661_v53 }
 0x1ac   :  { %2539 = vmatprep.subr.bf16.mxu1 %v5666_v54 }
 0x1ae   :  { %2499 = vmatpush1.bf16.msra.mxu0 %v5673_v55 }
 0x1af   :  { %2540 = vmatpush1.bf16.msra.mxu1 %v5678_v56  ;;  %2851 = vmatprep.subr.bf16.mxu0 %v5917_v18 }
 0x1b0   :  { %2892 = vmatprep.subr.bf16.mxu1 %v5922_v57 }
 0x251   :  { %v2151_v31 = vpop.f32.mrf.mxu0 }
 0x252   :  { %v2192_v32 = vpop.f32.mrf.mxu1  ;;  %v2199_v34 = vadd.f32 %v2151_v31, %v371_v30  ;;  %v5956_v30 = vld [vmem:[%s6555_s2 + $0xc8] ss:$16 sps:$4 sm:$0xff]   ;;  %v5965_v31 = vld [vmem:[%s6555_s2 + $0xa4] ss:$16 sps:$4 sm:$0xff]  }
 0x253   :  { %v2153_v35 = vpop.f32.mrf.mxu0  ;;  %v2201_v42 = vadd.f32 %v2192_v32, %v412_v37  ;;  %v5970_v32 = vld [vmem:[%s6555_s2 + $0xac] ss:$16 sps:$4 sm:$0xff]   ;;  %v5999_v37 = vld [vmem:[%s6555_s2 + $0x80] ss:$16 sps:$4 sm:$0xff]  }
 0x254   :  { %v2194_v36 = vpop.f32.mrf.mxu1  ;;  %v2203_v38 = vmul.f32 0.5, %v2199_v34  ;;  %v2200_v39 = vadd.f32 %v2153_v35, %v373_v33  ;;  %v5975_v33 = vld [vmem:[%s6555_s2 + $0xa0] ss:$16 sps:$4 sm:$0xff]   ;;  %v5980_v34 = vld [vmem:[%s6555_s2 + $0xa8] ss:$16 sps:$4 sm:$0xff]  }
 0x255   :  { %v2155_v40 = vpop.f32.mrf.mxu0  ;;  %v2202_v47 = vadd.f32 %v2194_v36, %v414_v46  ;;  %v5989_v35 = vld [vmem:[%s6555_s2 + $0x84] ss:$16 sps:$4 sm:$0xff]   ;;  %v5994_v36 = vld [vmem:[%s6555_s2 + $0x8c] ss:$16 sps:$4 sm:$0xff]   ;;  %v6052_v46 = vld [vmem:[%s6555_s2 + $0x48] ss:$16 sps:$4 sm:$0xff]  }
 0x256   :  { %v2196_v41 = vpop.f32.mrf.mxu1  ;;  %5123 = vtanh.f32 %v2203_v38  ;;  %v2207_v43 = vmul.f32 0.5, %v2200_v39  ;;  %v6004_v38 = vld [vmem:[%s6555_s2 + $0x88] ss:$16 sps:$4 sm:$0xff]   ;;  %v6013_v39 = vld [vmem:[%s6555_s2 + $0x64] ss:$16 sps:$4 sm:$0xff]  }
 0x257   :  { %v2156_v44 = vpop.f32.mrf.mxu0  ;;  %v2212_v48 = vmul.f32 0.5, %v2202_v47  ;;  %v6018_v40 = vld [vmem:[%s6555_s2 + $0x6c] ss:$16 sps:$4 sm:$0xff]   ;;  %v6023_v41 = vld [vmem:[%s6555_s2 + $0x60] ss:$16 sps:$4 sm:$0xff]  }
 0x258   :  { %v2197_v45 = vpop.f32.mrf.mxu1  ;;  %5125 = vtanh.f32 %v2207_v43  ;;  %v6037_v43 = vld [vmem:[%s6555_s2 + $0x44] ss:$16 sps:$4 sm:$0xff]   ;;  %v6042_v44 = vld [vmem:[%s6555_s2 + $0x4c] ss:$16 sps:$4 sm:$0xff]  }
 0x259   :  { %5127 = vtanh.f32 %v2201_v42  ;;  %v6028_v42 = vld [vmem:[%s6555_s2 + $0x68] ss:$16 sps:$4 sm:$0xff]   ;;  %v6047_v45 = vld [vmem:[%s6555_s2 + $0x40] ss:$16 sps:$4 sm:$0xff]   ;;  %v6061_v47 = vld [vmem:[%s6555_s2 + $0x24] ss:$16 sps:$4 sm:$0xff]  }
 0x25a   :  { %5129 = vtanh.f32 %v2212_v48  ;;  %v6066_v48 = vld [vmem:[%s6555_s2 + $0x2c] ss:$16 sps:$4 sm:$0xff]  }
 0x263   :  { %v5124_v49 = vpop.eup %5123 }
 0x264   :  { %v2205_v50 = vmul.f32 0.5, %v5124_v49  ;;  %v6071_v49 = vld [vmem:[%s6555_s2 + $0x20] ss:$16 sps:$4 sm:$0xff]  }
 0x265   :  { %v5126_v51 = vpop.eup %5125 }
 0x266   :  { %v2206_v52 = vadd.f32 0.5, %v2205_v50  ;;  %v2209_v53 = vmul.f32 0.5, %v5126_v51  ;;  %v5128_v54 = vpop.eup %5127  ;;  %v6076_v50 = vld [vmem:[%s6555_s2 + $0x28] ss:$16 sps:$4 sm:$0xff]   ;;  %v6085_v51 = vld [vmem:[%s6555_s2 + $0x4] ss:$16 sps:$4 sm:$0xff]  }
 0x267   :  { %v5130_v5 = vpop.eup %5129 }
 0x268   :  { %v2210_v55 = vadd.f32 0.5, %v2209_v53  ;;  %v2217_v56 = vmul.f32 %v5128_v54, %v2206_v52  ;;  %v2214_v20 = vmul.f32 0.5, %v5130_v5  ;;  %v6090_v52 = vld [vmem:[%s6555_s2 + $0xc] ss:$16 sps:$4 sm:$0xff]   ;;  %v6095_v53 = vld [vmem:[%s6555_s2] ss:$16 sps:$4 sm:$0xff]   ;;  %v561_v5 = vadd.f32 %v5740_v13, %v5789_v16 }
 0x269   :  { %v6100_v54 = vld [vmem:[%s6555_s2 + $0x8] ss:$16 sps:$4 sm:$0xff]  }
 0x26a   :  { %v2216_v3 = vmul.f32 %v2210_v55, %v5803_v21  ;;  %v2215_v6 = vadd.f32 0.5, %v2214_v20  ;;  %v559_v55 = vadd.f32 %v5736_v11, %v5787_v8 }
 0x26c   :  { %v5879_v4 = vadd.f32 %v2217_v56, %v2216_v3 }
 0x26e   :  { %5131 = vtanh.f32 %v5879_v4 }
 0x27b   :  { %v5132_v7 = vpop.eup %5131 }
 0x27c   :  { %v2220_v10 = vmul.f32 %v5132_v7, %v2215_v6 }
 0x27e   :  { %v2222_v17 = vcombine.high %v2220_v10, %v2220_v10  ;;  %v2229_v61 = vrot.slane %v2220_v10, %v5806_v15  ;;  %v2291_v0 = vpack.c.bf16 %v2220_v10, %v2220_v10  ;;  %v600_v10 = vadd.f32 %v5738_v12, %v5793_v24 }
 0x280   :  { %v2236_v62 = vrot.slane %v2222_v17, %v5806_v15  ;;  %v2237_v58 = vcombine.high %v2229_v61, %v2229_v61  ;;  %v2245_v14 = vrot.slane %v2229_v61, %v5806_v15  ;;  %4722 = vst.sshfl [vmem:[%s6558_s4 + $0x1] sm:$0x1 pattern:$0x73625140] %v2229_v61  ;;  %2517 = vmatmul.mubr.bf16.vlgmr.msra.gmra.mxu0 %v2291_v0 }
 0x281   :  { %2558 = vmatmul.mubr.bf16.vlgmr.msra.gmra.mxu1 %v2291_v0  ;;  %2883 = vmatprep.mubr.bf16.mxu0 %v6583_v27 }
 0x282   :  { %2924 = vmatprep.mubr.bf16.mxu1 %v6583_v27  ;;  %v2238_v21 = vcombine.high %v2236_v62, %v2236_v62  ;;  %v2252_v9 = vrot.slane %v2236_v62, %v5806_v15  ;;  %v2259_v60 = vrot.slane %v2237_v58, %v5806_v15  ;;  %v2267_v23 = vcombine.high %v2245_v14, %v2245_v14 }
 0x283   :  { %4723 = vst.sshfl [vmem:[%s6558_s4 + $0x9] sm:$0x1 pattern:$0x73625140] %v2237_v58  ;;  %2852 = vmatpush1.bf16.msra.mxu0 %v5927_v22  ;;  %2893 = vmatpush1.bf16.msra.mxu1 %v5932_v28 }
 0x284   :  { %4724 = vst.sshfl [vmem:[%s6558_s4 + $0x21] sm:$0x1 pattern:$0x73625140] %v2236_v62  ;;  %v2266_v26 = vrot.slane %v2238_v21, %v5806_v15  ;;  %v2268_v59 = vcombine.high %v2252_v9, %v2252_v9  ;;  %v2269_v25 = vcombine.high %v2259_v60, %v2259_v60  ;;  %2281 = vst [vmem:[%s6558_s4 + $0x11] sm:$0x1] %v2267_v23  ;;  %2853 = vmatprep.subr.bf16.mxu0 %v5941_v63 }
 0x285   :  { %4725 = vst.sshfl [vmem:[%s6558_s4 + $0x29] sm:$0x1 pattern:$0x73625140] %v2238_v21  ;;  %2894 = vmatprep.subr.bf16.mxu1 %v5946_v1  ;;  %v6584_v9 = vld [vmem:[#allocation5_spill] sm:$0xff] }
 0x286   :  { %v2270_v2 = vcombine.high %v2266_v26, %v2266_v26  ;;  %2282 = vst [vmem:[%s6558_s4 + $0x19] sm:$0x1] %v2269_v25  ;;  %2285 = vst [vmem:[%s6558_s4 + $0x31] sm:$0x1] %v2268_v59  ;;  %v602_v13 = vadd.f32 %v6584_v9, %v5799_v19 }
 0x287   :  { %2854 = vmatpush1.bf16.msra.mxu0 %v5951_v29  ;;  %2895 = vmatpush1.bf16.msra.mxu1 %v5956_v30 }
 0x288   :  { %2286 = vst [vmem:[%s6558_s4 + $0x39] sm:$0x1] %v2270_v2  ;;  %2855 = vmatprep.subr.bf16.mxu0 %v5965_v31  ;;  %2896 = vmatprep.subr.bf16.mxu1 %v5970_v32 }
 0x28b   :  { %2856 = vmatpush1.bf16.msra.mxu0 %v5975_v33  ;;  %2897 = vmatpush1.bf16.msra.mxu1 %v5980_v34 }
 0x28c   :  { %2857 = vmatprep.subr.bf16.mxu0 %v5989_v35  ;;  %2898 = vmatprep.subr.bf16.mxu1 %v5994_v36 }
 0x28f   :  { %2858 = vmatpush1.bf16.msra.mxu0 %v5999_v37  ;;  %2899 = vmatpush1.bf16.msra.mxu1 %v6004_v38 }
 0x290   :  { %2859 = vmatprep.subr.bf16.mxu0 %v6013_v39  ;;  %2900 = vmatprep.subr.bf16.mxu1 %v6018_v40 }
 0x293   :  { %2860 = vmatpush1.bf16.msra.mxu0 %v6023_v41  ;;  %2901 = vmatpush1.bf16.msra.mxu1 %v6028_v42 }
 0x294   :  { %2861 = vmatprep.subr.bf16.mxu0 %v6037_v43  ;;  %2902 = vmatprep.subr.bf16.mxu1 %v6042_v44 }
 0x297   :  { %2862 = vmatpush1.bf16.msra.mxu0 %v6047_v45  ;;  %2903 = vmatpush1.bf16.msra.mxu1 %v6052_v46 }
 0x298   :  { %2863 = vmatprep.subr.bf16.mxu0 %v6061_v47  ;;  %2904 = vmatprep.subr.bf16.mxu1 %v6066_v48 }
 0x29b   :  { %2864 = vmatpush1.bf16.msra.mxu0 %v6071_v49  ;;  %2905 = vmatpush1.bf16.msra.mxu1 %v6076_v50 }
 0x29c   :  { %2865 = vmatprep.subr.bf16.mxu0 %v6085_v51  ;;  %2906 = vmatprep.subr.bf16.mxu1 %v6090_v52 }
 0x29f   :  { %2866 = vmatpush1.bf16.msra.mxu0 %v6095_v53  ;;  %2907 = vmatpush1.bf16.msra.mxu1 %v6100_v54 }
 0x2a0   :  { %3218 = vmatprep.subr.bf16.mxu0 %v5917_v18  ;;  %3259 = vmatprep.subr.bf16.mxu1 %v5922_v57 }
 0x340   :  { %v2518_v56 = vpop.f32.mrf.mxu0 }
 0x341   :  { %v2559_v3 = vpop.f32.mrf.mxu1  ;;  %v2566_v20 = vadd.f32 %v2518_v56, %v559_v55 }
 0x342   :  { %v2520_v6 = vpop.f32.mrf.mxu0  ;;  %v2568_v58 = vadd.f32 %v2559_v3, %v600_v10 }
 0x343   :  { %v2561_v7 = vpop.f32.mrf.mxu1  ;;  %v2570_v17 = vmul.f32 0.5, %v2566_v20  ;;  %v2567_v61 = vadd.f32 %v2520_v6, %v561_v5 }
 0x344   :  { %v2522_v0 = vpop.f32.mrf.mxu0  ;;  %v2569_v60 = vadd.f32 %v2561_v7, %v602_v13 }
 0x345   :  { %v2563_v62 = vpop.f32.mrf.mxu1  ;;  %5133 = vtanh.f32 %v2570_v17  ;;  %v2574_v14 = vmul.f32 0.5, %v2567_v61 }
 0x346   :  { %v2523_v21 = vpop.f32.mrf.mxu0  ;;  %v2579_v23 = vmul.f32 0.5, %v2569_v60 }
 0x347   :  { %v2564_v11 = vpop.f32.mrf.mxu1  ;;  %5135 = vtanh.f32 %v2574_v14 }
 0x348   :  { %5137 = vtanh.f32 %v2568_v58 }
 0x349   :  { %5139 = vtanh.f32 %v2579_v23 }
 0x352   :  { %v5134_v26 = vpop.eup %5133 }
 0x353   :  { %v2572_v59 = vmul.f32 0.5, %v5134_v26 }
 0x354   :  { %v5136_v25 = vpop.eup %5135 }
 0x355   :  { %v2573_v12 = vadd.f32 0.5, %v2572_v59  ;;  %v2576_v2 = vmul.f32 0.5, %v5136_v25  ;;  %v5138_v55 = vpop.eup %5137 }
 0x356   :  { %v5140_v6 = vpop.eup %5139 }
 0x357   :  { %v2577_v56 = vadd.f32 0.5, %v2576_v2  ;;  %v2584_v5 = vmul.f32 %v5138_v55, %v2573_v12  ;;  %v2581_v10 = vmul.f32 0.5, %v5140_v6  ;;  %v6585_v12 = vld [vmem:[#allocation6_spill] sm:$0xff] }
 0x358   :  { %v747_v2 = vadd.f32 %v6585_v12, %v5787_v8 }
 0x359   :  { %v2583_v3 = vmul.f32 %v2577_v56, %v5879_v4  ;;  %v2582_v17 = vadd.f32 0.5, %v2581_v10 }
 0x35b   :  { %v6117_v20 = vadd.f32 %v2584_v5, %v2583_v3  ;;  %v6586_v5 = vld [vmem:[#allocation8_spill] sm:$0xff] }
 0x35c   :  { %v749_v3 = vadd.f32 %v6586_v5, %v5789_v16 }
 0x35d   :  { %5141 = vtanh.f32 %v6117_v20 }
 0x36a   :  { %v5142_v7 = vpop.eup %5141 }
 0x36b   :  { %v2587_v61 = vmul.f32 %v5142_v7, %v2582_v17  ;;  %v6587_v7 = vld [vmem:[#allocation7_spill] sm:$0xff] }
 0x36d   :  { %v2589_v0 = vcombine.high %v2587_v61, %v2587_v61  ;;  %v2596_v62 = vrot.slane %v2587_v61, %v5806_v15  ;;  %v2658_v58 = vpack.c.bf16 %v2587_v61, %v2587_v61  ;;  %v788_v61 = vadd.f32 %v6587_v7, %v5793_v24 }
 0x36f   :  { %v2603_v14 = vrot.slane %v2589_v0, %v5806_v15  ;;  %v2604_v21 = vcombine.high %v2596_v62, %v2596_v62  ;;  %v2612_v11 = vrot.slane %v2596_v62, %v5806_v15  ;;  %4758 = vst.sshfl [vmem:[%s6558_s4 + $0x2] sm:$0x1 pattern:$0x73625140] %v2596_v62  ;;  %2884 = vmatmul.mubr.bf16.vlgmr.msra.gmra.mxu0 %v2658_v58 }
 0x370   :  { %2925 = vmatmul.mubr.bf16.vlgmr.msra.gmra.mxu1 %v2658_v58  ;;  %3219 = vmatpush1.bf16.msra.mxu0 %v5927_v22 }
 0x371   :  { %3260 = vmatpush1.bf16.msra.mxu1 %v5932_v28  ;;  %v2605_v4 = vcombine.high %v2603_v14, %v2603_v14  ;;  %v2619_v9 = vrot.slane %v2603_v14, %v5806_v15  ;;  %v2626_v13 = vrot.slane %v2604_v21, %v5806_v15  ;;  %v2634_v60 = vcombine.high %v2612_v11, %v2612_v11 }
 0x372   :  { %4759 = vst.sshfl [vmem:[%s6558_s4 + $0xa] sm:$0x1 pattern:$0x73625140] %v2604_v21  ;;  %3220 = vmatprep.subr.bf16.mxu0 %v5941_v63  ;;  %3261 = vmatprep.subr.bf16.mxu1 %v5946_v1 }
 0x373   :  { %4760 = vst.sshfl [vmem:[%s6558_s4 + $0x22] sm:$0x1 pattern:$0x73625140] %v2603_v14  ;;  %3250 = vmatprep.mubr.bf16.mxu0 %v6583_v27  ;;  %v2633_v23 = vrot.slane %v2605_v4, %v5806_v15  ;;  %v2635_v26 = vcombine.high %v2619_v9, %v2619_v9  ;;  %v2636_v59 = vcombine.high %v2626_v13, %v2626_v13  ;;  %2648 = vst [vmem:[%s6558_s4 + $0x12] sm:$0x1] %v2634_v60 }
 0x374   :  { %4761 = vst.sshfl [vmem:[%s6558_s4 + $0x2a] sm:$0x1 pattern:$0x73625140] %v2605_v4  ;;  %3291 = vmatprep.mubr.bf16.mxu1 %v6583_v27  ;;  %3221 = vmatpush1.bf16.msra.mxu0 %v5951_v29  ;;  %v6588_v13 = vld [vmem:[#allocation9_spill] sm:$0xff] }
 0x375   :  { %3262 = vmatpush1.bf16.msra.mxu1 %v5956_v30  ;;  %v2637_v25 = vcombine.high %v2633_v23, %v2633_v23  ;;  %2649 = vst [vmem:[%s6558_s4 + $0x1a] sm:$0x1] %v2636_v59  ;;  %2652 = vst [vmem:[%s6558_s4 + $0x32] sm:$0x1] %v2635_v26  ;;  %3222 = vmatprep.subr.bf16.mxu0 %v5965_v31  ;;  %v790_v60 = vadd.f32 %v6588_v13, %v5799_v19 }
 0x376   :  { %3263 = vmatprep.subr.bf16.mxu1 %v5970_v32 }
 0x377   :  { %2653 = vst [vmem:[%s6558_s4 + $0x3a] sm:$0x1] %v2637_v25 }
 0x378   :  { %3223 = vmatpush1.bf16.msra.mxu0 %v5975_v33 }
 0x379   :  { %3264 = vmatpush1.bf16.msra.mxu1 %v5980_v34  ;;  %3224 = vmatprep.subr.bf16.mxu0 %v5989_v35 }
 0x37a   :  { %3265 = vmatprep.subr.bf16.mxu1 %v5994_v36 }
 0x37c   :  { %3225 = vmatpush1.bf16.msra.mxu0 %v5999_v37 }
 0x37d   :  { %3266 = vmatpush1.bf16.msra.mxu1 %v6004_v38  ;;  %3226 = vmatprep.subr.bf16.mxu0 %v6013_v39 }
 0x37e   :  { %3267 = vmatprep.subr.bf16.mxu1 %v6018_v40 }
 0x380   :  { %3227 = vmatpush1.bf16.msra.mxu0 %v6023_v41 }
 0x381   :  { %3268 = vmatpush1.bf16.msra.mxu1 %v6028_v42  ;;  %3228 = vmatprep.subr.bf16.mxu0 %v6037_v43 }
 0x382   :  { %3269 = vmatprep.subr.bf16.mxu1 %v6042_v44 }
 0x384   :  { %3229 = vmatpush1.bf16.msra.mxu0 %v6047_v45 }
 0x385   :  { %3270 = vmatpush1.bf16.msra.mxu1 %v6052_v46  ;;  %3230 = vmatprep.subr.bf16.mxu0 %v6061_v47 }
 0x386   :  { %3271 = vmatprep.subr.bf16.mxu1 %v6066_v48 }
 0x388   :  { %3231 = vmatpush1.bf16.msra.mxu0 %v6071_v49 }
 0x389   :  { %3272 = vmatpush1.bf16.msra.mxu1 %v6076_v50  ;;  %3232 = vmatprep.subr.bf16.mxu0 %v6085_v51 }
 0x38a   :  { %3273 = vmatprep.subr.bf16.mxu1 %v6090_v52 }
 0x38c   :  { %3233 = vmatpush1.bf16.msra.mxu0 %v6095_v53 }
 0x38d   :  { %3274 = vmatpush1.bf16.msra.mxu1 %v6100_v54  ;;  %3585 = vmatprep.subr.bf16.mxu0 %v5917_v18 }
 0x38e   :  { %3626 = vmatprep.subr.bf16.mxu1 %v5922_v57 }
 0x42f   :  { %v2885_v55 = vpop.f32.mrf.mxu0 }
 0x430   :  { %v2926_v56 = vpop.f32.mrf.mxu1  ;;  %v2933_v6 = vadd.f32 %v2885_v55, %v747_v2 }
 0x431   :  { %v2887_v10 = vpop.f32.mrf.mxu0  ;;  %v2935_v21 = vadd.f32 %v2926_v56, %v788_v61 }
 0x432   :  { %v2928_v17 = vpop.f32.mrf.mxu1  ;;  %v2937_v0 = vmul.f32 0.5, %v2933_v6  ;;  %v2934_v62 = vadd.f32 %v2887_v10, %v749_v3 }
 0x433   :  { %v2889_v58 = vpop.f32.mrf.mxu0  ;;  %v2936_v23 = vadd.f32 %v2928_v17, %v790_v60 }
 0x434   :  { %v2930_v14 = vpop.f32.mrf.mxu1  ;;  %5143 = vtanh.f32 %v2937_v0  ;;  %v2941_v11 = vmul.f32 0.5, %v2934_v62 }
 0x435   :  { %v2890_v4 = vpop.f32.mrf.mxu0  ;;  %v2946_v26 = vmul.f32 0.5, %v2936_v23 }
 0x436   :  { %v2931_v9 = vpop.f32.mrf.mxu1  ;;  %5145 = vtanh.f32 %v2941_v11 }
 0x437   :  { %5147 = vtanh.f32 %v2935_v21 }
 0x438   :  { %5149 = vtanh.f32 %v2946_v26 }
 0x441   :  { %v5144_v59 = vpop.eup %5143 }
 0x442   :  { %v2939_v25 = vmul.f32 0.5, %v5144_v59 }
 0x443   :  { %v5146_v12 = vpop.eup %5145 }
 0x444   :  { %v2940_v2 = vadd.f32 0.5, %v2939_v25  ;;  %v2943_v55 = vmul.f32 0.5, %v5146_v12  ;;  %v5148_v5 = vpop.eup %5147 }
 0x445   :  { %v5150_v7 = vpop.eup %5149 }
 0x446   :  { %v2944_v3 = vadd.f32 0.5, %v2943_v55  ;;  %v2951_v6 = vmul.f32 %v5148_v5, %v2940_v2  ;;  %v2948_v61 = vmul.f32 0.5, %v5150_v7  ;;  %v6589_v2 = vld [vmem:[#allocation10_spill] sm:$0xff] }
 0x447   :  { %v935_v55 = vadd.f32 %v6589_v2, %v5787_v8 }
 0x448   :  { %v2950_v56 = vmul.f32 %v2944_v3, %v6117_v20  ;;  %v2949_v0 = vadd.f32 0.5, %v2948_v61 }
 0x44a   :  { %v6193_v10 = vadd.f32 %v2951_v6, %v2950_v56  ;;  %v6590_v6 = vld [vmem:[#allocation12_spill] sm:$0xff] }
 0x44b   :  { %v937_v56 = vadd.f32 %v6590_v6, %v5789_v16 }
 0x44c   :  { %5151 = vtanh.f32 %v6193_v10 }
 0x459   :  { %v5152_v17 = vpop.eup %5151 }
 0x45a   :  { %v2954_v62 = vmul.f32 %v5152_v17, %v2949_v0  ;;  %v6591_v17 = vld [vmem:[#allocation11_spill] sm:$0xff] }
 0x45c   :  { %v2956_v58 = vcombine.high %v2954_v62, %v2954_v62  ;;  %v2963_v14 = vrot.slane %v2954_v62, %v5806_v15  ;;  %v3025_v21 = vpack.c.bf16 %v2954_v62, %v2954_v62  ;;  %v976_v62 = vadd.f32 %v6591_v17, %v5793_v24 }
 0x45e   :  { %v2970_v11 = vrot.slane %v2956_v58, %v5806_v15  ;;  %v2971_v4 = vcombine.high %v2963_v14, %v2963_v14  ;;  %v2979_v9 = vrot.slane %v2963_v14, %v5806_v15  ;;  %4794 = vst.sshfl [vmem:[%s6558_s4 + $0x3] sm:$0x1 pattern:$0x73625140] %v2963_v14  ;;  %3251 = vmatmul.mubr.bf16.vlgmr.msra.gmra.mxu0 %v3025_v21 }
 0x45f   :  { %3292 = vmatmul.mubr.bf16.vlgmr.msra.gmra.mxu1 %v3025_v21  ;;  %3586 = vmatpush1.bf16.msra.mxu0 %v5927_v22 }
 0x460   :  { %3627 = vmatpush1.bf16.msra.mxu1 %v5932_v28  ;;  %v2972_v20 = vcombine.high %v2970_v11, %v2970_v11  ;;  %v2986_v13 = vrot.slane %v2970_v11, %v5806_v15  ;;  %v2993_v60 = vrot.slane %v2971_v4, %v5806_v15  ;;  %v3001_v23 = vcombine.high %v2979_v9, %v2979_v9 }
 0x461   :  { %4795 = vst.sshfl [vmem:[%s6558_s4 + $0xb] sm:$0x1 pattern:$0x73625140] %v2971_v4  ;;  %3587 = vmatprep.subr.bf16.mxu0 %v5941_v63  ;;  %3628 = vmatprep.subr.bf16.mxu1 %v5946_v1 }
 0x462   :  { %4796 = vst.sshfl [vmem:[%s6558_s4 + $0x23] sm:$0x1 pattern:$0x73625140] %v2970_v11  ;;  %3617 = vmatprep.mubr.bf16.mxu0 %v6583_v27  ;;  %v3000_v26 = vrot.slane %v2972_v20, %v5806_v15  ;;  %v3002_v59 = vcombine.high %v2986_v13, %v2986_v13  ;;  %v3003_v25 = vcombine.high %v2993_v60, %v2993_v60  ;;  %3015 = vst [vmem:[%s6558_s4 + $0x13] sm:$0x1] %v3001_v23 }
 0x463   :  { %4797 = vst.sshfl [vmem:[%s6558_s4 + $0x2b] sm:$0x1 pattern:$0x73625140] %v2972_v20  ;;  %3658 = vmatprep.mubr.bf16.mxu1 %v6583_v27  ;;  %3588 = vmatpush1.bf16.msra.mxu0 %v5951_v29  ;;  %v6592_v20 = vld [vmem:[#allocation13_spill] sm:$0xff] }
 0x464   :  { %3629 = vmatpush1.bf16.msra.mxu1 %v5956_v30  ;;  %v3004_v12 = vcombine.high %v3000_v26, %v3000_v26  ;;  %3016 = vst [vmem:[%s6558_s4 + $0x1b] sm:$0x1] %v3003_v25  ;;  %3019 = vst [vmem:[%s6558_s4 + $0x33] sm:$0x1] %v3002_v59  ;;  %3589 = vmatprep.subr.bf16.mxu0 %v5965_v31  ;;  %v978_v13 = vadd.f32 %v6592_v20, %v5799_v19 }
 0x465   :  { %3630 = vmatprep.subr.bf16.mxu1 %v5970_v32 }
 0x466   :  { %3020 = vst [vmem:[%s6558_s4 + $0x3b] sm:$0x1] %v3004_v12 }
 0x467   :  { %3590 = vmatpush1.bf16.msra.mxu0 %v5975_v33 }
 0x468   :  { %3631 = vmatpush1.bf16.msra.mxu1 %v5980_v34  ;;  %3591 = vmatprep.subr.bf16.mxu0 %v5989_v35 }
 0x469   :  { %3632 = vmatprep.subr.bf16.mxu1 %v5994_v36 }
 0x46b   :  { %3592 = vmatpush1.bf16.msra.mxu0 %v5999_v37 }
 0x46c   :  { %3633 = vmatpush1.bf16.msra.mxu1 %v6004_v38  ;;  %3593 = vmatprep.subr.bf16.mxu0 %v6013_v39 }
 0x46d   :  { %3634 = vmatprep.subr.bf16.mxu1 %v6018_v40 }
 0x46f   :  { %3594 = vmatpush1.bf16.msra.mxu0 %v6023_v41 }
 0x470   :  { %3635 = vmatpush1.bf16.msra.mxu1 %v6028_v42  ;;  %3595 = vmatprep.subr.bf16.mxu0 %v6037_v43 }
 0x471   :  { %3636 = vmatprep.subr.bf16.mxu1 %v6042_v44 }
 0x473   :  { %3596 = vmatpush1.bf16.msra.mxu0 %v6047_v45 }
 0x474   :  { %3637 = vmatpush1.bf16.msra.mxu1 %v6052_v46  ;;  %3597 = vmatprep.subr.bf16.mxu0 %v6061_v47 }
 0x475   :  { %3638 = vmatprep.subr.bf16.mxu1 %v6066_v48 }
 0x477   :  { %3598 = vmatpush1.bf16.msra.mxu0 %v6071_v49 }
 0x478   :  { %3639 = vmatpush1.bf16.msra.mxu1 %v6076_v50  ;;  %3599 = vmatprep.subr.bf16.mxu0 %v6085_v51 }
 0x479   :  { %3640 = vmatprep.subr.bf16.mxu1 %v6090_v52 }
 0x47b   :  { %3600 = vmatpush1.bf16.msra.mxu0 %v6095_v53 }
 0x47c   :  { %3641 = vmatpush1.bf16.msra.mxu1 %v6100_v54  ;;  %3952 = vmatprep.subr.bf16.mxu0 %v5917_v18 }
 0x47d   :  { %3993 = vmatprep.subr.bf16.mxu1 %v5922_v57 }
 0x51e   :  { %v3252_v5 = vpop.f32.mrf.mxu0 }
 0x51f   :  { %v3293_v3 = vpop.f32.mrf.mxu1  ;;  %v3300_v7 = vadd.f32 %v3252_v5, %v935_v55 }
 0x520   :  { %v3254_v61 = vpop.f32.mrf.mxu0  ;;  %v3302_v57 = vadd.f32 %v3293_v3, %v976_v62 }
 0x521   :  { %v3295_v0 = vpop.f32.mrf.mxu1  ;;  %v3304_v58 = vmul.f32 0.5, %v3300_v7  ;;  %v3301_v14 = vadd.f32 %v3254_v61, %v937_v56 }
 0x522   :  { %v3256_v21 = vpop.f32.mrf.mxu0  ;;  %v3303_v60 = vadd.f32 %v3295_v0, %v978_v13 }
 0x523   :  { %v3297_v18 = vpop.f32.mrf.mxu1  ;;  %5153 = vtanh.f32 %v3304_v58  ;;  %v3308_v11 = vmul.f32 0.5, %v3301_v14 }
 0x524   :  { %v3257_v4 = vpop.f32.mrf.mxu0  ;;  %v3313_v23 = vmul.f32 0.5, %v3303_v60 }
 0x525   :  { %v3298_v9 = vpop.f32.mrf.mxu1  ;;  %5155 = vtanh.f32 %v3308_v11 }
 0x526   :  { %5157 = vtanh.f32 %v3302_v57 }
 0x527   :  { %5159 = vtanh.f32 %v3313_v23 }
 0x530   :  { %v5154_v26 = vpop.eup %5153 }
 0x531   :  { %v3306_v59 = vmul.f32 0.5, %v5154_v26 }
 0x532   :  { %v5156_v25 = vpop.eup %5155 }
 0x533   :  { %v3307_v12 = vadd.f32 0.5, %v3306_v59  ;;  %v3310_v2 = vmul.f32 0.5, %v5156_v25  ;;  %v5158_v55 = vpop.eup %5157 }
 0x534   :  { %v5160_v7 = vpop.eup %5159 }
 0x535   :  { %v3311_v5 = vadd.f32 0.5, %v3310_v2  ;;  %v3318_v6 = vmul.f32 %v5158_v55, %v3307_v12  ;;  %v3315_v61 = vmul.f32 0.5, %v5160_v7 }
 0x537   :  { %v3317_v3 = vmul.f32 %v3311_v5, %v6193_v10  ;;  %v3316_v17 = vadd.f32 0.5, %v3315_v61 }
 0x539   :  { %v6269_v56 = vadd.f32 %v3318_v6, %v3317_v3 }
 0x53b   :  { %5161 = vtanh.f32 %v6269_v56 }
 0x548   :  { %v5162_v0 = vpop.eup %5161 }
 0x549   :  { %v3321_v62 = vmul.f32 %v5162_v0, %v3316_v17 }
 0x54b   :  { %v3323_v58 = vcombine.high %v3321_v62, %v3321_v62  ;;  %v3330_v14 = vrot.slane %v3321_v62, %v5806_v15  ;;  %v3392_v21 = vpack.c.bf16 %v3321_v62, %v3321_v62 }
 0x54d   :  { %v3337_v18 = vrot.slane %v3323_v58, %v5806_v15  ;;  %v3338_v57 = vcombine.high %v3330_v14, %v3330_v14  ;;  %v3346_v11 = vrot.slane %v3330_v14, %v5806_v15  ;;  %4830 = vst.sshfl [vmem:[%s6558_s4 + $0x4] sm:$0x1 pattern:$0x73625140] %v3330_v14  ;;  %3618 = vmatmul.mubr.bf16.vlgmr.msra.gmra.mxu0 %v3392_v21 }
 0x54e   :  { %3659 = vmatmul.mubr.bf16.vlgmr.msra.gmra.mxu1 %v3392_v21  ;;  %3953 = vmatpush1.bf16.msra.mxu0 %v5927_v22 }
 0x54f   :  { %3994 = vmatpush1.bf16.msra.mxu1 %v5932_v28  ;;  %v3339_v10 = vcombine.high %v3337_v18, %v3337_v18  ;;  %v3353_v4 = vrot.slane %v3337_v18, %v5806_v15  ;;  %v3360_v9 = vrot.slane %v3338_v57, %v5806_v15  ;;  %v3368_v20 = vcombine.high %v3346_v11, %v3346_v11 }
 0x550   :  { %4831 = vst.sshfl [vmem:[%s6558_s4 + $0xc] sm:$0x1 pattern:$0x73625140] %v3338_v57  ;;  %3954 = vmatprep.subr.bf16.mxu0 %v5941_v63  ;;  %3995 = vmatprep.subr.bf16.mxu1 %v5946_v1  ;;  %v6593_v1 = vld [vmem:[#allocation14_spill] sm:$0xff] }
 0x551   :  { %4832 = vst.sshfl [vmem:[%s6558_s4 + $0x24] sm:$0x1 pattern:$0x73625140] %v3337_v18  ;;  %3984 = vmatprep.mubr.bf16.mxu0 %v6583_v27  ;;  %v3367_v22 = vrot.slane %v3339_v10, %v5806_v15  ;;  %v3369_v28 = vcombine.high %v3353_v4, %v3353_v4  ;;  %v3370_v13 = vcombine.high %v3360_v9, %v3360_v9  ;;  %3382 = vst [vmem:[%s6558_s4 + $0x14] sm:$0x1] %v3368_v20 }
 0x552   :  { %4833 = vst.sshfl [vmem:[%s6558_s4 + $0x2c] sm:$0x1 pattern:$0x73625140] %v3339_v10  ;;  %4025 = vmatprep.mubr.bf16.mxu1 %v6583_v27  ;;  %3955 = vmatpush1.bf16.msra.mxu0 %v5951_v29  ;;  %v1123_v29 = vadd.f32 %v6593_v1, %v5787_v8  ;;  %v5067_v4 = vld [vmem:[%s6555_s2 + $0xe4] ss:$16 sps:$4 sm:$0xff]  }
 0x553   :  { %3996 = vmatpush1.bf16.msra.mxu1 %v5956_v30  ;;  %v3371_v63 = vcombine.high %v3367_v22, %v3367_v22  ;;  %3383 = vst [vmem:[%s6558_s4 + $0x1c] sm:$0x1] %v3370_v13  ;;  %3386 = vst [vmem:[%s6558_s4 + $0x34] sm:$0x1] %v3369_v28  ;;  %3956 = vmatprep.subr.bf16.mxu0 %v5965_v31  ;;  %v5070_v9 = vld [vmem:[%s6555_s2 + $0xec] ss:$16 sps:$4 sm:$0xff]  }
 0x554   :  { %3997 = vmatprep.subr.bf16.mxu1 %v5970_v32  ;;  %v6594_v32 = vld [vmem:[#allocation16_spill] sm:$0xff]  ;;  %v5065_v20 = vld [vmem:[%s6555_s2 + $0xe0] ss:$16 sps:$4 sm:$0xff]   ;;  %v5073_v28 = vld [vmem:[%s6555_s2 + $0xc4] ss:$16 sps:$4 sm:$0xff]  }
 0x555   :  { %3387 = vst [vmem:[%s6558_s4 + $0x3c] sm:$0x1] %v3371_v63  ;;  %v5068_v22 = vld [vmem:[%s6555_s2 + $0xe8] ss:$16 sps:$4 sm:$0xff]   ;;  %v5076_v13 = vld [vmem:[%s6555_s2 + $0xcc] ss:$16 sps:$4 sm:$0xff]  }
 0x556   :  { %3957 = vmatpush1.bf16.msra.mxu0 %v5975_v33  ;;  %v1125_v33 = vadd.f32 %v6594_v32, %v5789_v16  ;;  %v5071_v63 = vld [vmem:[%s6555_s2 + $0xc0] ss:$16 sps:$4 sm:$0xff]   ;;  %v5074_v1 = vld [vmem:[%s6555_s2 + $0xc8] ss:$16 sps:$4 sm:$0xff]  }
 0x557   :  { %3998 = vmatpush1.bf16.msra.mxu1 %v5980_v34  ;;  %3958 = vmatprep.subr.bf16.mxu0 %v5989_v35  ;;  %v5080_v32 = vld [vmem:[%s6555_s2 + $0xa8] ss:$16 sps:$4 sm:$0xff]  }
 0x558   :  { %3999 = vmatprep.subr.bf16.mxu1 %v5994_v36 }
 0x55a   :  { %3959 = vmatpush1.bf16.msra.mxu0 %v5999_v37  ;;  %v6595_v37 = vld [vmem:[#allocation15_spill] sm:$0xff] }
 0x55b   :  { %4000 = vmatpush1.bf16.msra.mxu1 %v6004_v38  ;;  %3960 = vmatprep.subr.bf16.mxu0 %v6013_v39  ;;  %v1164_v38 = vadd.f32 %v6595_v37, %v5793_v24  ;;  %v5091_v37 = vld [vmem:[%s6555_s2 + $0x64] ss:$16 sps:$4 sm:$0xff]  }
 0x55c   :  { %4001 = vmatprep.subr.bf16.mxu1 %v6018_v40 }
 0x55e   :  { %3961 = vmatpush1.bf16.msra.mxu0 %v6023_v41 }
 0x55f   :  { %4002 = vmatpush1.bf16.msra.mxu1 %v6028_v42  ;;  %3962 = vmatprep.subr.bf16.mxu0 %v6037_v43 }
 0x560   :  { %4003 = vmatprep.subr.bf16.mxu1 %v6042_v44 }
 0x562   :  { %3963 = vmatpush1.bf16.msra.mxu0 %v6047_v45 }
 0x563   :  { %4004 = vmatpush1.bf16.msra.mxu1 %v6052_v46  ;;  %3964 = vmatprep.subr.bf16.mxu0 %v6061_v47  ;;  %v6596_v47 = vld [vmem:[#allocation17_spill] sm:$0xff] }
 0x564   :  { %4005 = vmatprep.subr.bf16.mxu1 %v6066_v48  ;;  %v1166_v48 = vadd.f32 %v6596_v47, %v5799_v19  ;;  %v5101_v47 = vld [vmem:[%s6555_s2 + $0x20] ss:$16 sps:$4 sm:$0xff]  }
 0x566   :  { %3965 = vmatpush1.bf16.msra.mxu0 %v6071_v49 }
 0x567   :  { %4006 = vmatpush1.bf16.msra.mxu1 %v6076_v50  ;;  %3966 = vmatprep.subr.bf16.mxu0 %v6085_v51 }
 0x568   :  { %4007 = vmatprep.subr.bf16.mxu1 %v6090_v52 }
 0x56a   :  { %3967 = vmatpush1.bf16.msra.mxu0 %v6095_v53 }
 0x56b   :  { %4008 = vmatpush1.bf16.msra.mxu1 %v6100_v54  ;;  %4319 = vmatprep.subr.bf16.mxu0 %v5067_v4 }
 0x56c   :  { %4360 = vmatprep.subr.bf16.mxu1 %v5070_v9 }
 0x60d   :  { %v3619_v30 = vpop.f32.mrf.mxu0 }
 0x60e   :  { %v3660_v31 = vpop.f32.mrf.mxu1  ;;  %v3667_v34 = vadd.f32 %v3619_v30, %v1123_v29  ;;  %v5079_v29 = vld [vmem:[%s6555_s2 + $0xa4] ss:$16 sps:$4 sm:$0xff]   ;;  %v5082_v30 = vld [vmem:[%s6555_s2 + $0xac] ss:$16 sps:$4 sm:$0xff]  }
 0x60f   :  { %v3621_v35 = vpop.f32.mrf.mxu0  ;;  %v3669_v43 = vadd.f32 %v3660_v31, %v1164_v38  ;;  %v5077_v31 = vld [vmem:[%s6555_s2 + $0xa0] ss:$16 sps:$4 sm:$0xff]   ;;  %v5094_v38 = vld [vmem:[%s6555_s2 + $0x6c] ss:$16 sps:$4 sm:$0xff]  }
 0x610   :  { %v3662_v36 = vpop.f32.mrf.mxu1  ;;  %v3671_v39 = vmul.f32 0.5, %v3667_v34  ;;  %v3668_v40 = vadd.f32 %v3621_v35, %v1125_v33  ;;  %v5085_v33 = vld [vmem:[%s6555_s2 + $0x84] ss:$16 sps:$4 sm:$0xff]   ;;  %v5088_v34 = vld [vmem:[%s6555_s2 + $0x8c] ss:$16 sps:$4 sm:$0xff]  }
 0x611   :  { %v3623_v41 = vpop.f32.mrf.mxu0  ;;  %v3670_v49 = vadd.f32 %v3662_v36, %v1166_v48  ;;  %v5083_v35 = vld [vmem:[%s6555_s2 + $0x80] ss:$16 sps:$4 sm:$0xff]   ;;  %v5086_v36 = vld [vmem:[%s6555_s2 + $0x88] ss:$16 sps:$4 sm:$0xff]  }
 0x612   :  { %v3664_v42 = vpop.f32.mrf.mxu1  ;;  %5163 = vtanh.f32 %v3671_v39  ;;  %v3675_v44 = vmul.f32 0.5, %v3668_v40  ;;  %v5089_v39 = vld [vmem:[%s6555_s2 + $0x60] ss:$16 sps:$4 sm:$0xff]   ;;  %v5092_v40 = vld [vmem:[%s6555_s2 + $0x68] ss:$16 sps:$4 sm:$0xff]  }
 0x613   :  { %v3624_v45 = vpop.f32.mrf.mxu0  ;;  %v3680_v50 = vmul.f32 0.5, %v3670_v49  ;;  %v5097_v41 = vld [vmem:[%s6555_s2 + $0x44] ss:$16 sps:$4 sm:$0xff]   ;;  %v5100_v42 = vld [vmem:[%s6555_s2 + $0x4c] ss:$16 sps:$4 sm:$0xff]  }
 0x614   :  { %v3665_v46 = vpop.f32.mrf.mxu1  ;;  %5165 = vtanh.f32 %v3675_v44  ;;  %v5098_v44 = vld [vmem:[%s6555_s2 + $0x48] ss:$16 sps:$4 sm:$0xff]   ;;  %v5103_v45 = vld [vmem:[%s6555_s2 + $0x24] ss:$16 sps:$4 sm:$0xff]  }
 0x615   :  { %5167 = vtanh.f32 %v3669_v43  ;;  %v5095_v43 = vld [vmem:[%s6555_s2 + $0x40] ss:$16 sps:$4 sm:$0xff]   ;;  %v5106_v46 = vld [vmem:[%s6555_s2 + $0x2c] ss:$16 sps:$4 sm:$0xff]   ;;  %v5104_v48 = vld [vmem:[%s6555_s2 + $0x28] ss:$16 sps:$4 sm:$0xff]  }
 0x616   :  { %5169 = vtanh.f32 %v3680_v50  ;;  %v5109_v49 = vld [vmem:[%s6555_s2 + $0x4] ss:$16 sps:$4 sm:$0xff]   ;;  %v5112_v50 = vld [vmem:[%s6555_s2 + $0xc] ss:$16 sps:$4 sm:$0xff]  }
 0x61f   :  { %v5164_v51 = vpop.eup %5163 }
 0x620   :  { %v3673_v52 = vmul.f32 0.5, %v5164_v51  ;;  %v5107_v51 = vld [vmem:[%s6555_s2] ss:$16 sps:$4 sm:$0xff]  }
 0x621   :  { %v5166_v53 = vpop.eup %5165 }
 0x622   :  { %v3674_v54 = vadd.f32 0.5, %v3673_v52  ;;  %v3677_v60 = vmul.f32 0.5, %v5166_v53  ;;  %v5168_v23 = vpop.eup %5167  ;;  %v5110_v52 = vld [vmem:[%s6555_s2 + $0x8] ss:$16 sps:$4 sm:$0xff]  }
 0x623   :  { %v5170_v2 = vpop.eup %5169  ;;  %v6597_v53 = vld [vmem:[#allocation18_spill] sm:$0xff] }
 0x624   :  { %v3678_v26 = vadd.f32 0.5, %v3677_v60  ;;  %v3685_v59 = vmul.f32 %v5168_v23, %v3674_v54  ;;  %v3682_v55 = vmul.f32 0.5, %v5170_v2  ;;  %v1311_v54 = vadd.f32 %v6597_v53, %v5787_v8 }
 0x626   :  { %v3684_v25 = vmul.f32 %v3678_v26, %v6269_v56  ;;  %v3683_v5 = vadd.f32 0.5, %v3682_v55  ;;  %v6598_v26 = vld [vmem:[#allocation20_spill] sm:$0xff] }
 0x628   :  { %v6343_v12 = vadd.f32 %v3685_v59, %v3684_v25  ;;  %v1313_v59 = vadd.f32 %v6598_v26, %v5789_v16 }
 0x62a   :  { %5171 = vtanh.f32 %v6343_v12 }
 0x637   :  { %v5172_v6 = vpop.eup %5171 }
 0x638   :  { %v3688_v3 = vmul.f32 %v5172_v6, %v3683_v5  ;;  %v6599_v5 = vld [vmem:[#allocation19_spill] sm:$0xff] }
 0x639   :  { %v1352_v6 = vadd.f32 %v6599_v5, %v5793_v24 }
 0x63a   :  { %v3690_v7 = vcombine.high %v3688_v3, %v3688_v3  ;;  %v3697_v61 = vrot.slane %v3688_v3, %v5806_v15  ;;  %v3759_v17 = vpack.c.bf16 %v3688_v3, %v3688_v3 }
 0x63c   :  { %v3704_v0 = vrot.slane %v3690_v7, %v5806_v15  ;;  %v3705_v62 = vcombine.high %v3697_v61, %v3697_v61  ;;  %v3713_v58 = vrot.slane %v3697_v61, %v5806_v15  ;;  %4866 = vst.sshfl [vmem:[%s6558_s4 + $0x5] sm:$0x1 pattern:$0x73625140] %v3697_v61  ;;  %3985 = vmatmul.mubr.bf16.vlgmr.msra.gmra.mxu0 %v3759_v17 }
 0x63d   :  { %4026 = vmatmul.mubr.bf16.vlgmr.msra.gmra.mxu1 %v3759_v17  ;;  %4351 = vmatprep.mubr.bf16.mxu0 %v6583_v27 }
 0x63e   :  { %4392 = vmatprep.mubr.bf16.mxu1 %v6583_v27  ;;  %v3706_v56 = vcombine.high %v3704_v0, %v3704_v0  ;;  %v3720_v14 = vrot.slane %v3704_v0, %v5806_v15  ;;  %v3727_v21 = vrot.slane %v3705_v62, %v5806_v15  ;;  %v3735_v18 = vcombine.high %v3713_v58, %v3713_v58 }
 0x63f   :  { %4867 = vst.sshfl [vmem:[%s6558_s4 + $0xd] sm:$0x1 pattern:$0x73625140] %v3705_v62  ;;  %4320 = vmatpush1.bf16.msra.mxu0 %v5065_v20  ;;  %4361 = vmatpush1.bf16.msra.mxu1 %v5068_v22 }
 0x640   :  { %4868 = vst.sshfl [vmem:[%s6558_s4 + $0x25] sm:$0x1 pattern:$0x73625140] %v3704_v0  ;;  %v3734_v57 = vrot.slane %v3706_v56, %v5806_v15  ;;  %v3736_v11 = vcombine.high %v3720_v14, %v3720_v14  ;;  %v3737_v10 = vcombine.high %v3727_v21, %v3727_v21  ;;  %3749 = vst [vmem:[%s6558_s4 + $0x15] sm:$0x1] %v3735_v18  ;;  %4321 = vmatprep.subr.bf16.mxu0 %v5073_v28 }
 0x641   :  { %4869 = vst.sshfl [vmem:[%s6558_s4 + $0x2d] sm:$0x1 pattern:$0x73625140] %v3706_v56  ;;  %4362 = vmatprep.subr.bf16.mxu1 %v5076_v13  ;;  %v6600_v14 = vld [vmem:[#allocation21_spill] sm:$0xff] }
 0x642   :  { %v3738_v27 = vcombine.high %v3734_v57, %v3734_v57  ;;  %3750 = vst [vmem:[%s6558_s4 + $0x1d] sm:$0x1] %v3737_v10  ;;  %3753 = vst [vmem:[%s6558_s4 + $0x35] sm:$0x1] %v3736_v11  ;;  %v1354_v21 = vadd.f32 %v6600_v14, %v5799_v19 }
 0x643   :  { %4322 = vmatpush1.bf16.msra.mxu0 %v5071_v63  ;;  %4363 = vmatpush1.bf16.msra.mxu1 %v5074_v1 }
 0x644   :  { %3754 = vst [vmem:[%s6558_s4 + $0x3d] sm:$0x1] %v3738_v27  ;;  %4323 = vmatprep.subr.bf16.mxu0 %v5079_v29  ;;  %4364 = vmatprep.subr.bf16.mxu1 %v5082_v30 }
 0x647   :  { %4324 = vmatpush1.bf16.msra.mxu0 %v5077_v31  ;;  %4365 = vmatpush1.bf16.msra.mxu1 %v5080_v32 }
 0x648   :  { %4325 = vmatprep.subr.bf16.mxu0 %v5085_v33  ;;  %4366 = vmatprep.subr.bf16.mxu1 %v5088_v34 }
 0x64b   :  { %4326 = vmatpush1.bf16.msra.mxu0 %v5083_v35  ;;  %4367 = vmatpush1.bf16.msra.mxu1 %v5086_v36 }
 0x64c   :  { %4327 = vmatprep.subr.bf16.mxu0 %v5091_v37  ;;  %4368 = vmatprep.subr.bf16.mxu1 %v5094_v38 }
 0x64f   :  { %4328 = vmatpush1.bf16.msra.mxu0 %v5089_v39  ;;  %4369 = vmatpush1.bf16.msra.mxu1 %v5092_v40 }
 0x650   :  { %4329 = vmatprep.subr.bf16.mxu0 %v5097_v41  ;;  %4370 = vmatprep.subr.bf16.mxu1 %v5100_v42 }
 0x653   :  { %4330 = vmatpush1.bf16.msra.mxu0 %v5095_v43  ;;  %4371 = vmatpush1.bf16.msra.mxu1 %v5098_v44 }
 0x654   :  { %4331 = vmatprep.subr.bf16.mxu0 %v5103_v45  ;;  %4372 = vmatprep.subr.bf16.mxu1 %v5106_v46  ;;  %v6601_v46 = vld [vmem:[#allocation22_spill] sm:$0xff] }
 0x657   :  { %4332 = vmatpush1.bf16.msra.mxu0 %v5101_v47  ;;  %4373 = vmatpush1.bf16.msra.mxu1 %v5104_v48  ;;  %v1499_v47 = vadd.f32 %v6601_v46, %v5787_v8 }
 0x658   :  { %4333 = vmatprep.subr.bf16.mxu0 %v5109_v49  ;;  %4374 = vmatprep.subr.bf16.mxu1 %v5112_v50  ;;  %v6602_v50 = vld [vmem:[#allocation24_spill] sm:$0xff] }
 0x65b   :  { %4334 = vmatpush1.bf16.msra.mxu0 %v5107_v51  ;;  %4375 = vmatpush1.bf16.msra.mxu1 %v5110_v52  ;;  %v1501_v51 = vadd.f32 %v6602_v50, %v5789_v16 }
 0x6fc   :  { %v3986_v60 = vpop.f32.mrf.mxu0 }
 0x6fd   :  { %v4027_v23 = vpop.f32.mrf.mxu1  ;;  %v4034_v25 = vadd.f32 %v3986_v60, %v1311_v54  ;;  %v6603_v60 = vld [vmem:[#allocation23_spill] sm:$0xff] }
 0x6fe   :  { %v3988_v2 = vpop.f32.mrf.mxu0  ;;  %v4036_v0 = vadd.f32 %v4027_v23, %v1352_v6  ;;  %v1540_v23 = vadd.f32 %v6603_v60, %v5793_v24 }
 0x6ff   :  { %v4029_v55 = vpop.f32.mrf.mxu1  ;;  %v4038_v3 = vmul.f32 0.5, %v4034_v25  ;;  %v4035_v7 = vadd.f32 %v3988_v2, %v1313_v59 }
 0x700   :  { %v3990_v61 = vpop.f32.mrf.mxu0  ;;  %v4037_v18 = vadd.f32 %v4029_v55, %v1354_v21 }
 0x701   :  { %v4031_v17 = vpop.f32.mrf.mxu1  ;;  %5173 = vtanh.f32 %v4038_v3  ;;  %v4042_v62 = vmul.f32 0.5, %v4035_v7  ;;  %v6604_v3 = vld [vmem:[#allocation25_spill] sm:$0xff] }
 0x702   :  { %v3991_v58 = vpop.f32.mrf.mxu0  ;;  %v4047_v57 = vmul.f32 0.5, %v4037_v18  ;;  %v1542_v16 = vadd.f32 %v6604_v3, %v5799_v19 }
 0x703   :  { %v4032_v56 = vpop.f32.mrf.mxu1  ;;  %5175 = vtanh.f32 %v4042_v62 }
 0x704   :  { %5177 = vtanh.f32 %v4036_v0 }
 0x705   :  { %5179 = vtanh.f32 %v4047_v57 }
 0x70e   :  { %v5174_v11 = vpop.eup %5173 }
 0x70f   :  { %v4040_v10 = vmul.f32 0.5, %v5174_v11 }
 0x710   :  { %v5176_v27 = vpop.eup %5175 }
 0x711   :  { %v4041_v4 = vadd.f32 0.5, %v4040_v10  ;;  %v4044_v9 = vmul.f32 0.5, %v5176_v27  ;;  %v5178_v20 = vpop.eup %5177 }
 0x712   :  { %v5180_v1 = vpop.eup %5179 }
 0x713   :  { %v4045_v22 = vadd.f32 0.5, %v4044_v9  ;;  %v4052_v28 = vmul.f32 %v5178_v20, %v4041_v4  ;;  %v4049_v29 = vmul.f32 0.5, %v5180_v1 }
 0x715   :  { %v4051_v13 = vmul.f32 %v4045_v22, %v6343_v12  ;;  %v4050_v30 = vadd.f32 0.5, %v4049_v29 }
 0x717   :  { %v4053_v63 = vadd.f32 %v4052_v28, %v4051_v13 }
 0x719   :  { %5181 = vtanh.f32 %v4053_v63 }
 0x726   :  { %v5182_v31 = vpop.eup %5181 }
 0x727   :  { %v4055_v32 = vmul.f32 %v5182_v31, %v4050_v30 }
 0x729   :  { %v4057_v33 = vcombine.high %v4055_v32, %v4055_v32  ;;  %v4064_v34 = vrot.slane %v4055_v32, %v5806_v15  ;;  %v4126_v35 = vpack.c.bf16 %v4055_v32, %v4055_v32 }
 0x72b   :  { %v4071_v36 = vrot.slane %v4057_v33, %v5806_v15  ;;  %v4072_v37 = vcombine.high %v4064_v34, %v4064_v34  ;;  %v4080_v38 = vrot.slane %v4064_v34, %v5806_v15  ;;  %4902 = vst.sshfl [vmem:[%s6558_s4 + $0x6] sm:$0x1 pattern:$0x73625140] %v4064_v34  ;;  %4352 = vmatmul.mubr.bf16.vlgmr.msra.gmra.mxu0 %v4126_v35 }
 0x72c   :  { %4393 = vmatmul.mubr.bf16.vlgmr.msra.gmra.mxu1 %v4126_v35 }
 0x72d   :  { %v4073_v12 = vcombine.high %v4071_v36, %v4071_v36  ;;  %v4087_v39 = vrot.slane %v4071_v36, %v5806_v15  ;;  %v4094_v40 = vrot.slane %v4072_v37, %v5806_v15  ;;  %v4102_v41 = vcombine.high %v4080_v38, %v4080_v38  ;;  %4903 = vst.sshfl [vmem:[%s6558_s4 + $0xe] sm:$0x1 pattern:$0x73625140] %v4072_v37 }
 0x72e   :  { %4904 = vst.sshfl [vmem:[%s6558_s4 + $0x26] sm:$0x1 pattern:$0x73625140] %v4071_v36 }
 0x72f   :  { %v4101_v42 = vrot.slane %v4073_v12, %v5806_v15  ;;  %v4103_v43 = vcombine.high %v4087_v39, %v4087_v39  ;;  %v4104_v44 = vcombine.high %v4094_v40, %v4094_v40  ;;  %4116 = vst [vmem:[%s6558_s4 + $0x16] sm:$0x1] %v4102_v41  ;;  %4905 = vst.sshfl [vmem:[%s6558_s4 + $0x2e] sm:$0x1 pattern:$0x73625140] %v4073_v12 }
 0x731   :  { %v4105_v45 = vcombine.high %v4101_v42, %v4101_v42  ;;  %4117 = vst [vmem:[%s6558_s4 + $0x1e] sm:$0x1] %v4104_v44  ;;  %4120 = vst [vmem:[%s6558_s4 + $0x36] sm:$0x1] %v4103_v43 }
 0x733   :  { %4121 = vst [vmem:[%s6558_s4 + $0x3e] sm:$0x1] %v4105_v45 }
 0x7eb   :  { %v4353_v48 = vpop.f32.mrf.mxu0 }
 0x7ec   :  { %v4394_v49 = vpop.f32.mrf.mxu1  ;;  %v4401_v52 = vadd.f32 %v4353_v48, %v1499_v47 }
 0x7ed   :  { %v4355_v53 = vpop.f32.mrf.mxu0  ;;  %v4403_v55 = vadd.f32 %v4394_v49, %v1540_v23 }
 0x7ee   :  { %v4396_v54 = vpop.f32.mrf.mxu1  ;;  %v4405_v26 = vmul.f32 0.5, %v4401_v52  ;;  %v4402_v59 = vadd.f32 %v4355_v53, %v1501_v51 }
 0x7ef   :  { %v4357_v25 = vpop.f32.mrf.mxu0  ;;  %v4404_v7 = vadd.f32 %v4396_v54, %v1542_v16 }
 0x7f0   :  { %v4398_v2 = vpop.f32.mrf.mxu1  ;;  %5183 = vtanh.f32 %v4405_v26  ;;  %v4409_v5 = vmul.f32 0.5, %v4402_v59 }
 0x7f1   :  { %v4358_v6 = vpop.f32.mrf.mxu0  ;;  %v4414_v61 = vmul.f32 0.5, %v4404_v7 }
 0x7f2   :  { %v4399_v8 = vpop.f32.mrf.mxu1  ;;  %5185 = vtanh.f32 %v4409_v5 }
 0x7f3   :  { %5187 = vtanh.f32 %v4403_v55 }
 0x7f4   :  { %5189 = vtanh.f32 %v4414_v61 }
 0x7fd   :  { %v5184_v17 = vpop.eup %5183 }
 0x7fe   :  { %v4407_v0 = vmul.f32 0.5, %v5184_v17 }
 0x7ff   :  { %v5186_v62 = vpop.eup %5185 }
 0x800   :  { %v4408_v24 = vadd.f32 0.5, %v4407_v0  ;;  %v4411_v58 = vmul.f32 0.5, %v5186_v62  ;;  %v5188_v56 = vpop.eup %5187 }
 0x801   :  { %v5190_v11 = vpop.eup %5189 }
 0x802   :  { %v4412_v14 = vadd.f32 0.5, %v4411_v58  ;;  %v4419_v21 = vmul.f32 %v5188_v56, %v4408_v24  ;;  %v4416_v19 = vmul.f32 0.5, %v5190_v11 }
 0x804   :  { %v4418_v18 = vmul.f32 %v4412_v14, %v4053_v63  ;;  %v4417_v10 = vadd.f32 0.5, %v4416_v19 }
 0x806   :  { %v4420_v57 = vadd.f32 %v4419_v21, %v4418_v18 }
 0x808   :  { %5191 = vtanh.f32 %v4420_v57  ;;  %4494 = vst [vmem:[%s6559_s5] sm:$0xff] %v4420_v57 }
 0x815   :  { %v5192_v27 = vpop.eup %5191 }
 0x816   :  { %v4422_v4 = vmul.f32 %v5192_v27, %v4417_v10 }
 0x818   :  { %v4424_v9 = vcombine.high %v4422_v4, %v4422_v4  ;;  %v4431_v20 = vrot.slane %v4422_v4, %v5806_v15 }
 0x81a   :  { %v4438_v22 = vrot.slane %v4424_v9, %v5806_v15  ;;  %v4439_v28 = vcombine.high %v4431_v20, %v4431_v20  ;;  %v4447_v13 = vrot.slane %v4431_v20, %v5806_v15  ;;  %4938 = vst.sshfl [vmem:[%s6558_s4 + $0x7] sm:$0x1 pattern:$0x73625140] %v4431_v20 }
 0x81c   :  { %v4440_v63 = vcombine.high %v4438_v22, %v4438_v22  ;;  %v4454_v1 = vrot.slane %v4438_v22, %v5806_v15  ;;  %v4461_v29 = vrot.slane %v4439_v28, %v5806_v15  ;;  %v4469_v30 = vcombine.high %v4447_v13, %v4447_v13  ;;  %4939 = vst.sshfl [vmem:[%s6558_s4 + $0xf] sm:$0x1 pattern:$0x73625140] %v4439_v28 }
 0x81d   :  { %4940 = vst.sshfl [vmem:[%s6558_s4 + $0x27] sm:$0x1 pattern:$0x73625140] %v4438_v22 }
 0x81e   :  { %v4468_v31 = vrot.slane %v4440_v63, %v5806_v15  ;;  %v4470_v32 = vcombine.high %v4454_v1, %v4454_v1  ;;  %v4471_v33 = vcombine.high %v4461_v29, %v4461_v29  ;;  %4483 = vst [vmem:[%s6558_s4 + $0x17] sm:$0x1] %v4469_v30  ;;  %4941 = vst.sshfl [vmem:[%s6558_s4 + $0x2f] sm:$0x1 pattern:$0x73625140] %v4440_v63 }
 0x820   :  { %v4472_v34 = vcombine.high %v4468_v31, %v4468_v31  ;;  %4484 = vst [vmem:[%s6558_s4 + $0x1f] sm:$0x1] %v4471_v33  ;;  %4487 = vst [vmem:[%s6558_s4 + $0x37] sm:$0x1] %v4470_v32 }
 0x822   :  { %4488 = vst [vmem:[%s6558_s4 + $0x3f] sm:$0x1] %v4472_v34 }

</bundles_post_ra>
